<compile_context>
chip_gen: v7x
topology: tpu7x:2x2x1
jax: 0.10.0
libtpu: 0.0.40
codegen_flags: <defaults>
</compile_context>

<pallas_src>
import functools
import math

import jax
import jax.numpy as jnp
from jax import lax
from jax.experimental import pallas as pl
from jax.experimental.pallas import tpu as pltpu


def _round_up(x: int, m: int) -> int:
    return ((x + m - 1) // m) * m


# ---------------------------------------------------------------------------
# Pass 1: row-wise L2 normalization.  Features get the folded sqrt(1/T) scale
# and go out in bf16 (MXU operand); labels stay f32 (feed a hard threshold).
# ---------------------------------------------------------------------------
def _normalize_kernel(f_ref, lab_ref, fo_ref, labo_ref, *, feat_scale):
    f = f_ref[...].astype(jnp.float32)
    lab = lab_ref[...].astype(jnp.float32)
    # F.normalize(x, dim=1): x / max(||x||, 1e-12) == x * rsqrt(max(||x||^2, 1e-24))
    f_n = f * lax.rsqrt(jnp.maximum(jnp.sum(f * f, axis=1, keepdims=True), 1e-24))
    lab_n = lab * lax.rsqrt(
        jnp.maximum(jnp.sum(lab * lab, axis=1, keepdims=True), 1e-24))
    fo_ref[...] = (f_n * feat_scale).astype(fo_ref.dtype)
    labo_ref[...] = lab_n.astype(labo_ref.dtype)


# ---------------------------------------------------------------------------
# Pass 2: tiled SupCon with online (flash-style) accumulation.
# ---------------------------------------------------------------------------
def _supcon_tile_kernel(qf_ref, kf_ref, ql_ref, kl_ref,     # inputs
                        loss_ref, npos_ref,                 # outputs (1, TQ) f32
                        m_acc, l_acc, spos_acc, npos_acc,   # scratch  (1, TQ) f32
                        *, scale, threshold, b_actual, b_pad, tq, tk):
    qi = pl.program_id(0)
    ki = pl.program_id(1)

    @pl.when(ki == 0)
    def _():
        m_acc[...] = jnp.full_like(m_acc, -jnp.inf)
        l_acc[...] = jnp.zeros_like(l_acc)
        spos_acc[...] = jnp.zeros_like(spos_acc)
        npos_acc[...] = jnp.zeros_like(npos_acc)

    # Transposed tiles: s_t[a, b] = <key_a, query_b> / T (temperature is folded
    # into the operands as sqrt(1/T) each).  Keys on sublanes, queries on
    # lanes -> per-query reductions land on lane-dense (1, TQ) vectors; no
    # explicit .T / XLU transpose before the MXU.
    s_t = lax.dot_general(kf_ref[...], qf_ref[...],
                          dimension_numbers=(((1,), (1,)), ((), ())),
                          preferred_element_type=jnp.float32)
    lab_t = lax.dot_general(kl_ref[...], ql_ref[...],
                            dimension_numbers=(((1,), (1,)), ((), ())),
                            preferred_element_type=jnp.float32)

    # Cheap (TK,1)/(1,TQ) iotas; the equality broadcasts to (TK,TQ).
    key_col = ki * tk + lax.broadcasted_iota(jnp.int32, (tk, 1), 0)
    qry_row = qi * tq + lax.broadcasted_iota(jnp.int32, (1, tq), 1)
    diag = key_col == qry_row
    pos = jnp.logical_and(lab_t > threshold, jnp.logical_not(diag))

    if b_actual < b_pad:  # static branch: compiles out when B is tile-aligned
        key_valid = key_col < b_actual               # (TK, 1), broadcasts
        s_t = jnp.where(key_valid, s_t, -jnp.inf)
        pos = jnp.logical_and(pos, key_valid)

    # Online softmax statistics over the key axis (axis 0).
    m_prev = m_acc[...]
    m_new = jnp.maximum(m_prev, jnp.max(s_t, axis=0, keepdims=True))
    alpha = jnp.exp(m_prev - m_new)
    p = jnp.exp(s_t - m_new)
    l_acc[...] = alpha * l_acc[...] + jnp.sum(p, axis=0, keepdims=True)
    m_acc[...] = m_new
    # sum(mask * unshifted logits) and positive counts need no rescaling.
    # jnp.where (not mask*s_t) so masked -inf entries contribute 0, not NaN.
    spos_acc[...] = spos_acc[...] + jnp.sum(jnp.where(pos, s_t, 0.0),
                                            axis=0, keepdims=True)
    npos_acc[...] = npos_acc[...] + jnp.sum(pos.astype(jnp.float32),
                                            axis=0, keepdims=True)

    @pl.when(ki == pl.num_programs(1) - 1)
    def _():
        n_pos = npos_acc[...]
        # sum(mask*log_prob) = sum(mask*sim/T) - n_pos*(m + log(sum_exp + 1e-8))
        log_denom = m_acc[...] + jnp.log(l_acc[...] + 1e-8)
        mean_log_prob_pos = (spos_acc[...] - n_pos * log_denom) / (n_pos + 1e-8)
        loss_ref[...] = (-scale) * mean_log_prob_pos
        npos_ref[...] = n_pos


# ---------------------------------------------------------------------------
# Wrapper
# ---------------------------------------------------------------------------
def supcon_loss(features, labels, *, temperature: float = 0.1,
                base_temperature: float = 0.07, threshold: float = 0.8,
                tq: int = 128, tk: int = 256, compute_dtype=jnp.bfloat16):
    """SupConLoss.forward as Pallas TPU kernels. Returns a scalar."""
    b, d = features.shape
    l_dim = labels.shape[1]

    b8 = _round_up(b, 8)
    tq = min(tq, b8)                       # keep >= 2 query tiles when possible
    tk = min(tk, b8)
    b_pad = _round_up(b, math.lcm(tq, tk))
    if b_pad != b:
        features = jnp.pad(features, ((0, b_pad - b), (0, 0)))
        labels = jnp.pad(labels, ((0, b_pad - b), (0, 0)))

    # --- pass 1: normalize once with large, memory-friendly row blocks ------
    pass1_rows = b_pad
    if b_pad > 1024:
        for cand in range(1024, 0, -8):
            if b_pad % cand == 0:
                pass1_rows = cand
                break

    feat_scale = float(math.sqrt(1.0 / temperature))
    f_n, lab_n = pl.pallas_call(
        functools.partial(_normalize_kernel, feat_scale=feat_scale),
        grid=(b_pad // pass1_rows,),
        in_specs=[pl.BlockSpec((pass1_rows, d), lambda i: (i, 0)),
                  pl.BlockSpec((pass1_rows, l_dim), lambda i: (i, 0))],
        out_specs=(pl.BlockSpec((pass1_rows, d), lambda i: (i, 0)),
                   pl.BlockSpec((pass1_rows, l_dim), lambda i: (i, 0))),
        out_shape=(jax.ShapeDtypeStruct((b_pad, d), compute_dtype),
                   jax.ShapeDtypeStruct((b_pad, l_dim), jnp.float32)),
        compiler_params=pltpu.CompilerParams(
            dimension_semantics=("parallel",)),
    )(features, labels)

    # --- pass 2: tiled SupCon, online accumulation ---------------------------
    kernel = functools.partial(
        _supcon_tile_kernel,
        scale=float(temperature / base_temperature),
        threshold=float(threshold),
        b_actual=b, b_pad=b_pad, tq=tq, tk=tk)

    loss_rows, n_pos = pl.pallas_call(
        kernel,
        grid=(b_pad // tq, b_pad // tk),
        in_specs=[pl.BlockSpec((tq, d), lambda qi, ki: (qi, 0)),      # query feats
                  pl.BlockSpec((tk, d), lambda qi, ki: (ki, 0)),      # key feats
                  pl.BlockSpec((tq, l_dim), lambda qi, ki: (qi, 0)),  # query labels
                  pl.BlockSpec((tk, l_dim), lambda qi, ki: (ki, 0))], # key labels
        out_specs=(pl.BlockSpec((1, tq), lambda qi, ki: (0, qi)),     # lane-dense
                   pl.BlockSpec((1, tq), lambda qi, ki: (0, qi))),
        out_shape=(jax.ShapeDtypeStruct((1, b_pad), jnp.float32),
                   jax.ShapeDtypeStruct((1, b_pad), jnp.float32)),
        scratch_shapes=[pltpu.VMEM((1, tq), jnp.float32)] * 4,
        compiler_params=pltpu.CompilerParams(
            dimension_semantics=("parallel", "arbitrary")),
    )(f_n, f_n, lab_n, lab_n)

    loss_rows = loss_rows[0, :b]
    n_pos = n_pos[0, :b]

    # torch: loss[valid_samples].mean() if any valid else 0.0
    valid = n_pos > 0.0
    n_valid = jnp.sum(valid.astype(jnp.float32))
    total = jnp.sum(jnp.where(valid, loss_rows, 0.0))
    return jnp.where(n_valid > 0.0, total / jnp.maximum(n_valid, 1.0),
                     jnp.float32(0.0))


# ---------------------------------------------------------------------------
# Pure-JAX reference (mirrors the PyTorch module) for a sanity check.
# ---------------------------------------------------------------------------
def _supcon_reference(features, labels, temperature=0.1, base_temperature=0.07):
    f = features / jnp.maximum(
        jnp.linalg.norm(features, axis=1, keepdims=True), 1e-12)
    sim = jnp.matmul(f, f.T) / temperature
    m = jnp.max(sim, axis=1, keepdims=True)
    logits = sim - m
    ln = labels / jnp.maximum(
        jnp.linalg.norm(labels, axis=1, keepdims=True), 1e-12)
    mask = (jnp.matmul(ln, ln.T) > 0.8) & ~jnp.eye(features.shape[0], dtype=bool)
    maskf = mask.astype(jnp.float32)
    log_prob = logits - jnp.log(
        jnp.sum(jnp.exp(logits), axis=1, keepdims=True) + 1e-8)
    mean_log_prob_pos = jnp.sum(maskf * log_prob, axis=1) / (
        jnp.sum(maskf, axis=1) + 1e-8)
    loss = -(temperature / base_temperature) * mean_log_prob_pos
    valid = jnp.sum(maskf, axis=1) > 0
    n_valid = jnp.sum(valid.astype(jnp.float32))
    return jnp.where(n_valid > 0,
                     jnp.sum(jnp.where(valid, loss, 0.0)) /
                     jnp.maximum(n_valid, 1.0),
                     0.0)


if __name__ == "__main__":
    key = jax.random.PRNGKey(0)
    k_feat, k_noise = jax.random.split(key)

    # grid = (2, 1): two 128-row query tiles (keeps both v7x TCs busy), one
    # 256-row key tile filling the 256-wide MXU on v6e/v7x.
    B, D, NUM_CLASSES = 256, 64, 16
    features = jax.random.normal(k_feat, (B, D), dtype=jnp.float32)
    classes = jnp.arange(B, dtype=jnp.int32) % NUM_CLASSES
    labels = jax.nn.one_hot(classes, NUM_CLASSES, dtype=jnp.float32)
    labels = labels + 0.01 * jax.random.normal(k_noise, labels.shape, jnp.float32)

    out = jax.jit(supcon_loss)(features, labels)
    jax.block_until_ready(out)

    ref = _supcon_reference(features, labels)
    rel_err = abs(float(out) - float(ref)) / max(abs(float(ref)), 1e-6)
    assert rel_err < 5e-2, (float(out), float(ref), rel_err)
    print("KERNEL_OK")
</pallas_src>

<mosaic_0001>
module attributes {stable_mosaic.version = 11 : i64} {
  func.func @_normalize_kernel(%arg0: i32, %arg1: memref<256x64xf32, #tpu.memory_space<vmem>>, %arg2: memref<256x16xf32, #tpu.memory_space<vmem>>, %arg3: memref<256x64xbf16, #tpu.memory_space<vmem>>, %arg4: memref<256x16xf32, #tpu.memory_space<vmem>>) attributes {dimension_semantics = [#tpu.dimension_semantics<parallel>], iteration_bounds = array<i64: 1>, scalar_prefetch = 0 : i64, scratch_operands = 0 : i64, tpu.core_type = #tpu.core_type<tc>, window_params = [{transform_indices = @transform_0, window_bounds = array<i64: 256, 64>}, {transform_indices = @transform_1, window_bounds = array<i64: 256, 16>}, {transform_indices = @transform_2, window_bounds = array<i64: 256, 64>}, {transform_indices = @transform_3, window_bounds = array<i64: 256, 16>}]} {
    %c0 = arith.constant 0 : index
    %c0_0 = arith.constant 0 : index
    %0 = vector.load %arg1[%c0, %c0_0] : memref<256x64xf32, #tpu.memory_space<vmem>>, vector<256x64xf32>
    %c0_1 = arith.constant 0 : index
    %c0_2 = arith.constant 0 : index
    %1 = vector.load %arg2[%c0_1, %c0_2] : memref<256x16xf32, #tpu.memory_space<vmem>>, vector<256x16xf32>
    %2 = arith.mulf %0, %0 : vector<256x64xf32>
    %cst = arith.constant dense<0.000000e+00> : vector<256xf32>
    %3 = vector.multi_reduction <add>, %2, %cst [1] : vector<256x64xf32> to vector<256xf32>
    %4 = vector.shape_cast %3 : vector<256xf32> to vector<256x1xf32>
    %cst_3 = arith.constant 1.000000e-24 : f32
    %5 = vector.broadcast %cst_3 : f32 to vector<256x1xf32>
    %6 = arith.maximumf %4, %5 : vector<256x1xf32>
    %7 = math.rsqrt %6 : vector<256x1xf32>
    %8 = vector.broadcast %7 : vector<256x1xf32> to vector<256x64xf32>
    %9 = arith.mulf %0, %8 : vector<256x64xf32>
    %10 = arith.mulf %1, %1 : vector<256x16xf32>
    %cst_4 = arith.constant dense<0.000000e+00> : vector<256xf32>
    %11 = vector.multi_reduction <add>, %10, %cst_4 [1] : vector<256x16xf32> to vector<256xf32>
    %12 = vector.shape_cast %11 : vector<256xf32> to vector<256x1xf32>
    %cst_5 = arith.constant 1.000000e-24 : f32
    %13 = vector.broadcast %cst_5 : f32 to vector<256x1xf32>
    %14 = arith.maximumf %12, %13 : vector<256x1xf32>
    %15 = math.rsqrt %14 : vector<256x1xf32>
    %16 = vector.broadcast %15 : vector<256x1xf32> to vector<256x16xf32>
    %17 = arith.mulf %1, %16 : vector<256x16xf32>
    %cst_6 = arith.constant 3.1622777 : f32
    %18 = vector.broadcast %cst_6 : f32 to vector<256x64xf32>
    %19 = arith.mulf %9, %18 : vector<256x64xf32>
    %20 = arith.truncf %19 : vector<256x64xf32> to vector<256x64xbf16>
    %c0_7 = arith.constant 0 : index
    %c0_8 = arith.constant 0 : index
    %21 = vector.load %arg3[%c0_7, %c0_8] : memref<256x64xbf16, #tpu.memory_space<vmem>>, vector<256x64xbf16>
    tpu.vector_store %arg3[%c0_7, %c0_8], %20 {strides = array<i32>} : memref<256x64xbf16, #tpu.memory_space<vmem>>, vector<256x64xbf16>,
    %c0_9 = arith.constant 0 : index
    %c0_10 = arith.constant 0 : index
    %22 = vector.load %arg4[%c0_9, %c0_10] : memref<256x16xf32, #tpu.memory_space<vmem>>, vector<256x16xf32>
    tpu.vector_store %arg4[%c0_9, %c0_10], %17 {strides = array<i32>} : memref<256x16xf32, #tpu.memory_space<vmem>>, vector<256x16xf32>,
    return
  }
  func.func @transform_0(%arg0: i32) -> (i32, i32) {
    %c0_i32 = arith.constant 0 : i32
    %c0_i32_0 = arith.constant 0 : i32
    return %arg0, %c0_i32 : i32, i32
  }
  func.func @transform_1(%arg0: i32) -> (i32, i32) {
    %c0_i32 = arith.constant 0 : i32
    %c0_i32_0 = arith.constant 0 : i32
    return %arg0, %c0_i32 : i32, i32
  }
  func.func @transform_2(%arg0: i32) -> (i32, i32) {
    %c0_i32 = arith.constant 0 : i32
    %c0_i32_0 = arith.constant 0 : i32
    return %arg0, %c0_i32 : i32, i32
  }
  func.func @transform_3(%arg0: i32) -> (i32, i32) {
    %c0_i32 = arith.constant 0 : i32
    %c0_i32_0 = arith.constant 0 : i32
    return %arg0, %c0_i32 : i32, i32
  }
}

module attributes {stable_mosaic.version = 11 : i64} {
  func.func @_supcon_tile_kernel(%arg0: i32, %arg1: i32, %arg2: memref<128x64xbf16, #tpu.memory_space<vmem>>, %arg3: memref<256x64xbf16, #tpu.memory_space<vmem>>, %arg4: memref<128x16xf32, #tpu.memory_space<vmem>>, %arg5: memref<256x16xf32, #tpu.memory_space<vmem>>, %arg6: memref<1x128xf32, #tpu.memory_space<vmem>>, %arg7: memref<1x128xf32, #tpu.memory_space<vmem>>, %arg8: memref<1x128xf32, #tpu.memory_space<vmem>>, %arg9: memref<1x128xf32, #tpu.memory_space<vmem>>, %arg10: memref<1x128xf32, #tpu.memory_space<vmem>>, %arg11: memref<1x128xf32, #tpu.memory_space<vmem>>) attributes {dimension_semantics = [#tpu.dimension_semantics<parallel>, #tpu.dimension_semantics<arbitrary>], iteration_bounds = array<i64: 2, 1>, scalar_prefetch = 0 : i64, scratch_operands = 4 : i64, tpu.core_type = #tpu.core_type<tc>, window_params = [{transform_indices = @transform_0, window_bounds = array<i64: 128, 64>}, {transform_indices = @transform_1, window_bounds = array<i64: 256, 64>}, {transform_indices = @transform_2, window_bounds = array<i64: 128, 16>}, {transform_indices = @transform_3, window_bounds = array<i64: 256, 16>}, {transform_indices = @transform_4, window_bounds = array<i64: 1, 128>}, {transform_indices = @transform_5, window_bounds = array<i64: 1, 128>}]} {
    %c0_i32 = arith.constant 0 : i32
    %0 = arith.cmpi eq, %arg1, %c0_i32 : i32
    %1 = arith.extui %0 : i1 to i32
    %c0_i32_0 = arith.constant 0 : i32
    %2 = arith.cmpi ne, %1, %c0_i32_0 : i32
    scf.if %2 {
      %cst_34 = arith.constant 0xFF800000 : f32
      %57 = vector.broadcast %cst_34 : f32 to vector<1x128xf32>
      %c0_35 = arith.constant 0 : index
      %c0_36 = arith.constant 0 : index
      %58 = vector.load %arg8[%c0_35, %c0_36] : memref<1x128xf32, #tpu.memory_space<vmem>>, vector<1x128xf32>
      tpu.vector_store %arg8[%c0_35, %c0_36], %57 {strides = array<i32>} : memref<1x128xf32, #tpu.memory_space<vmem>>, vector<1x128xf32>,
      %cst_37 = arith.constant 0.000000e+00 : f32
      %59 = vector.broadcast %cst_37 : f32 to vector<1x128xf32>
      %c0_38 = arith.constant 0 : index
      %c0_39 = arith.constant 0 : index
      %60 = vector.load %arg9[%c0_38, %c0_39] : memref<1x128xf32, #tpu.memory_space<vmem>>, vector<1x128xf32>
      tpu.vector_store %arg9[%c0_38, %c0_39], %59 {strides = array<i32>} : memref<1x128xf32, #tpu.memory_space<vmem>>, vector<1x128xf32>,
      %cst_40 = arith.constant 0.000000e+00 : f32
      %61 = vector.broadcast %cst_40 : f32 to vector<1x128xf32>
      %c0_41 = arith.constant 0 : index
      %c0_42 = arith.constant 0 : index
      %62 = vector.load %arg10[%c0_41, %c0_42] : memref<1x128xf32, #tpu.memory_space<vmem>>, vector<1x128xf32>
      tpu.vector_store %arg10[%c0_41, %c0_42], %61 {strides = array<i32>} : memref<1x128xf32, #tpu.memory_space<vmem>>, vector<1x128xf32>,
      %cst_43 = arith.constant 0.000000e+00 : f32
      %63 = vector.broadcast %cst_43 : f32 to vector<1x128xf32>
      %c0_44 = arith.constant 0 : index
      %c0_45 = arith.constant 0 : index
      %64 = vector.load %arg11[%c0_44, %c0_45] : memref<1x128xf32, #tpu.memory_space<vmem>>, vector<1x128xf32>
      tpu.vector_store %arg11[%c0_44, %c0_45], %63 {strides = array<i32>} : memref<1x128xf32, #tpu.memory_space<vmem>>, vector<1x128xf32>,
    } else {
    }
    %c0 = arith.constant 0 : index
    %c0_1 = arith.constant 0 : index
    %3 = vector.load %arg3[%c0, %c0_1] : memref<256x64xbf16, #tpu.memory_space<vmem>>, vector<256x64xbf16>
    %c0_2 = arith.constant 0 : index
    %c0_3 = arith.constant 0 : index
    %4 = vector.load %arg2[%c0_2, %c0_3] : memref<128x64xbf16, #tpu.memory_space<vmem>>, vector<128x64xbf16>
    %cst = arith.constant dense<0.000000e+00> : vector<256x128xf32>
    %5 = tpu.matmul %3, %4, %cst {dimension_numbers = #tpu.dot_dimension_numbers<[1], [1], [0], [0], [0, 0, 1, 0], [], []>} : vector<256x64xbf16>, vector<128x64xbf16>, vector<256x128xf32> -> vector<256x128xf32>
    %c0_4 = arith.constant 0 : index
    %c0_5 = arith.constant 0 : index
    %6 = vector.load %arg5[%c0_4, %c0_5] : memref<256x16xf32, #tpu.memory_space<vmem>>, vector<256x16xf32>
    %c0_6 = arith.constant 0 : index
    %c0_7 = arith.constant 0 : index
    %7 = vector.load %arg4[%c0_6, %c0_7] : memref<128x16xf32, #tpu.memory_space<vmem>>, vector<128x16xf32>
    %cst_8 = arith.constant dense<0.000000e+00> : vector<256x128xf32>
    %8 = tpu.matmul %6, %7, %cst_8 {dimension_numbers = #tpu.dot_dimension_numbers<[1], [1], [0], [0], [0, 0, 1, 0], [], []>} : vector<256x16xf32>, vector<128x16xf32>, vector<256x128xf32> -> vector<256x128xf32>
    %c256_i32 = arith.constant 256 : i32
    %9 = arith.muli %arg1, %c256_i32 : i32
    %10 = tpu.iota {dimensions = array<i32: 0>} : vector<256x1xi32>
    %11 = vector.broadcast %9 : i32 to vector<256x1xi32>
    %12 = arith.addi %11, %10 : vector<256x1xi32>
    %c128_i32 = arith.constant 128 : i32
    %13 = arith.muli %arg0, %c128_i32 : i32
    %14 = tpu.iota {dimensions = array<i32: 1>} : vector<1x128xi32>
    %15 = vector.broadcast %13 : i32 to vector<1x128xi32>
    %16 = arith.addi %15, %14 : vector<1x128xi32>
    %17 = vector.broadcast %12 : vector<256x1xi32> to vector<256x128xi32>
    %18 = vector.broadcast %16 : vector<1x128xi32> to vector<256x128xi32>
    %19 = arith.cmpi eq, %17, %18 : vector<256x128xi32>
    %cst_9 = arith.constant 8.000000e-01 : f32
    %20 = vector.broadcast %cst_9 : f32 to vector<256x128xf32>
    %21 = arith.cmpf ogt, %8, %20 : vector<256x128xf32>
    %cst_10 = arith.constant dense<true> : vector<256x128xi1>
    %22 = arith.xori %19, %cst_10 : vector<256x128xi1>
    %23 = arith.andi %21, %22 : vector<256x128xi1>
    %c0_11 = arith.constant 0 : index
    %c0_12 = arith.constant 0 : index
    %24 = vector.load %arg8[%c0_11, %c0_12] : memref<1x128xf32, #tpu.memory_space<vmem>>, vector<1x128xf32>
    %cst_13 = arith.constant dense<0xFF800000> : vector<128xf32>
    %25 = vector.multi_reduction <maximumf>, %5, %cst_13 [0] : vector<256x128xf32> to vector<128xf32>
    %26 = vector.shape_cast %25 : vector<128xf32> to vector<1x128xf32>
    %27 = arith.maximumf %24, %26 : vector<1x128xf32>
    %28 = arith.subf %24, %27 : vector<1x128xf32>
    %29 = math.exp %28 : vector<1x128xf32>
    %30 = vector.broadcast %27 : vector<1x128xf32> to vector<256x128xf32>
    %31 = arith.subf %5, %30 : vector<256x128xf32>
    %32 = math.exp %31 : vector<256x128xf32>
    %c0_14 = arith.constant 0 : index
    %c0_15 = arith.constant 0 : index
    %33 = vector.load %arg9[%c0_14, %c0_15] : memref<1x128xf32, #tpu.memory_space<vmem>>, vector<1x128xf32>
    %34 = arith.mulf %29, %33 : vector<1x128xf32>
    %cst_16 = arith.constant dense<0.000000e+00> : vector<128xf32>
    %35 = vector.multi_reduction <add>, %32, %cst_16 [0] : vector<256x128xf32> to vector<128xf32>
    %36 = vector.shape_cast %35 : vector<128xf32> to vector<1x128xf32>
    %37 = arith.addf %34, %36 : vector<1x128xf32>
    %c0_17 = arith.constant 0 : index
    %c0_18 = arith.constant 0 : index
    %38 = vector.load %arg9[%c0_17, %c0_18] : memref<1x128xf32, #tpu.memory_space<vmem>>, vector<1x128xf32>
    tpu.vector_store %arg9[%c0_17, %c0_18], %37 {strides = array<i32>} : memref<1x128xf32, #tpu.memory_space<vmem>>, vector<1x128xf32>,
    %c0_19 = arith.constant 0 : index
    %c0_20 = arith.constant 0 : index
    %39 = vector.load %arg8[%c0_19, %c0_20] : memref<1x128xf32, #tpu.memory_space<vmem>>, vector<1x128xf32>
    tpu.vector_store %arg8[%c0_19, %c0_20], %27 {strides = array<i32>} : memref<1x128xf32, #tpu.memory_space<vmem>>, vector<1x128xf32>,
    %c0_21 = arith.constant 0 : index
    %c0_22 = arith.constant 0 : index
    %40 = vector.load %arg10[%c0_21, %c0_22] : memref<1x128xf32, #tpu.memory_space<vmem>>, vector<1x128xf32>
    %cst_23 = arith.constant 0.000000e+00 : f32
    %41 = vector.broadcast %cst_23 : f32 to vector<256x128xf32>
    %42 = arith.select %23, %5, %41 : vector<256x128xi1>, vector<256x128xf32>
    %cst_24 = arith.constant dense<0.000000e+00> : vector<128xf32>
    %43 = vector.multi_reduction <add>, %42, %cst_24 [0] : vector<256x128xf32> to vector<128xf32>
    %44 = vector.shape_cast %43 : vector<128xf32> to vector<1x128xf32>
    %45 = arith.addf %40, %44 : vector<1x128xf32>
    %c0_25 = arith.constant 0 : index
    %c0_26 = arith.constant 0 : index
    %46 = vector.load %arg10[%c0_25, %c0_26] : memref<1x128xf32, #tpu.memory_space<vmem>>, vector<1x128xf32>
    tpu.vector_store %arg10[%c0_25, %c0_26], %45 {strides = array<i32>} : memref<1x128xf32, #tpu.memory_space<vmem>>, vector<1x128xf32>,
    %c0_27 = arith.constant 0 : index
    %c0_28 = arith.constant 0 : index
    %47 = vector.load %arg11[%c0_27, %c0_28] : memref<1x128xf32, #tpu.memory_space<vmem>>, vector<1x128xf32>
    %48 = arith.extui %23 : vector<256x128xi1> to vector<256x128xi32>
    %49 = arith.sitofp %48 : vector<256x128xi32> to vector<256x128xf32>
    %cst_29 = arith.constant dense<0.000000e+00> : vector<128xf32>
    %50 = vector.multi_reduction <add>, %49, %cst_29 [0] : vector<256x128xf32> to vector<128xf32>
    %51 = vector.shape_cast %50 : vector<128xf32> to vector<1x128xf32>
    %52 = arith.addf %47, %51 : vector<1x128xf32>
    %c0_30 = arith.constant 0 : index
    %c0_31 = arith.constant 0 : index
    %53 = vector.load %arg11[%c0_30, %c0_31] : memref<1x128xf32, #tpu.memory_space<vmem>>, vector<1x128xf32>
    tpu.vector_store %arg11[%c0_30, %c0_31], %52 {strides = array<i32>} : memref<1x128xf32, #tpu.memory_space<vmem>>, vector<1x128xf32>,
    %c0_i32_32 = arith.constant 0 : i32
    %54 = arith.cmpi eq, %arg1, %c0_i32_32 : i32
    %55 = arith.extui %54 : i1 to i32
    %c0_i32_33 = arith.constant 0 : i32
    %56 = arith.cmpi ne, %55, %c0_i32_33 : i32
    scf.if %56 {
      %c0_34 = arith.constant 0 : index
      %c0_35 = arith.constant 0 : index
      %57 = vector.load %arg11[%c0_34, %c0_35] : memref<1x128xf32, #tpu.memory_space<vmem>>, vector<1x128xf32>
      %c0_36 = arith.constant 0 : index
      %c0_37 = arith.constant 0 : index
      %58 = vector.load %arg8[%c0_36, %c0_37] : memref<1x128xf32, #tpu.memory_space<vmem>>, vector<1x128xf32>
      %c0_38 = arith.constant 0 : index
      %c0_39 = arith.constant 0 : index
      %59 = vector.load %arg9[%c0_38, %c0_39] : memref<1x128xf32, #tpu.memory_space<vmem>>, vector<1x128xf32>
      %cst_40 = arith.constant 9.99999993E-9 : f32
      %60 = vector.broadcast %cst_40 : f32 to vector<1x128xf32>
      %61 = arith.addf %59, %60 : vector<1x128xf32>
      %62 = math.log %61 : vector<1x128xf32>
      %63 = arith.addf %58, %62 : vector<1x128xf32>
      %c0_41 = arith.constant 0 : index
      %c0_42 = arith.constant 0 : index
      %64 = vector.load %arg10[%c0_41, %c0_42] : memref<1x128xf32, #tpu.memory_space<vmem>>, vector<1x128xf32>
      %65 = arith.mulf %57, %63 : vector<1x128xf32>
      %66 = arith.subf %64, %65 : vector<1x128xf32>
      %cst_43 = arith.constant 9.99999993E-9 : f32
      %67 = vector.broadcast %cst_43 : f32 to vector<1x128xf32>
      %68 = arith.addf %57, %67 : vector<1x128xf32>
      %69 = arith.divf %66, %68 : vector<1x128xf32>
      %cst_44 = arith.constant -1.42857146 : f32
      %70 = vector.broadcast %cst_44 : f32 to vector<1x128xf32>
      %71 = arith.mulf %70, %69 : vector<1x128xf32>
      %c0_45 = arith.constant 0 : index
      %c0_46 = arith.constant 0 : index
      %72 = vector.load %arg6[%c0_45, %c0_46] : memref<1x128xf32, #tpu.memory_space<vmem>>, vector<1x128xf32>
      tpu.vector_store %arg6[%c0_45, %c0_46], %71 {strides = array<i32>} : memref<1x128xf32, #tpu.memory_space<vmem>>, vector<1x128xf32>,
      %c0_47 = arith.constant 0 : index
      %c0_48 = arith.constant 0 : index
      %73 = vector.load %arg7[%c0_47, %c0_48] : memref<1x128xf32, #tpu.memory_space<vmem>>, vector<1x128xf32>
      tpu.vector_store %arg7[%c0_47, %c0_48], %57 {strides = array<i32>} : memref<1x128xf32, #tpu.memory_space<vmem>>, vector<1x128xf32>,
    } else {
    }
    return
  }
  func.func @transform_0(%arg0: i32, %arg1: i32) -> (i32, i32) {
    %c0_i32 = arith.constant 0 : i32
    %c0_i32_0 = arith.constant 0 : i32
    return %arg0, %c0_i32 : i32, i32
  }
  func.func @transform_1(%arg0: i32, %arg1: i32) -> (i32, i32) {
    %c0_i32 = arith.constant 0 : i32
    %c0_i32_0 = arith.constant 0 : i32
    return %arg1, %c0_i32 : i32, i32
  }
  func.func @transform_2(%arg0: i32, %arg1: i32) -> (i32, i32) {
    %c0_i32 = arith.constant 0 : i32
    %c0_i32_0 = arith.constant 0 : i32
    return %arg0, %c0_i32 : i32, i32
  }
  func.func @transform_3(%arg0: i32, %arg1: i32) -> (i32, i32) {
    %c0_i32 = arith.constant 0 : i32
    %c0_i32_0 = arith.constant 0 : i32
    return %arg1, %c0_i32 : i32, i32
  }
  func.func @transform_4(%arg0: i32, %arg1: i32) -> (i32, i32) {
    %c0_i32 = arith.constant 0 : i32
    %c0_i32_0 = arith.constant 0 : i32
    return %c0_i32, %arg0 : i32, i32
  }
  func.func @transform_5(%arg0: i32, %arg1: i32) -> (i32, i32) {
    %c0_i32 = arith.constant 0 : i32
    %c0_i32_0 = arith.constant 0 : i32
    return %c0_i32, %arg0 : i32, i32
  }
}

</mosaic_0001>

<bundles_post_ra>
// kernel: supcon_loss.2
= control target key start
LH: loop header
LB: loop body
LE: loop exit
PB: predicated region body
PF: predicated region fallthrough
CT: control target
= control target key end

     0   :  { %vm109_vm0 = vcmask 523264   ;;  %vm334_vm1 = vcmask 130048   ;;  %vm687_vm2 = vcmask 519168   ;;  %s1804_s0 = inlined_call_operand.vmem [shape: f32[256,64], index: 0, kind: input, shape index: {}]   ;;  %s1805_s1 = inlined_call_operand.vmem [shape: f32[256,16], index: 1, kind: input, shape index: {}]   ;;  %s1806_s2 = inlined_call_operand.vmem [shape: bf16[256,64], index: 2, kind: output, shape index: {0}]   ;;  %s1807_s3 = inlined_call_operand.vmem [shape: f32[256,16], index: 3, kind: output, shape index: {1}]  }
   0x1   :  { %v975_v0 = vld [vmem:[%s1804_s0 + $0x10] sm:$0xff]  ;;  %v980_v1 = vld [vmem:[%s1804_s0] sm:$0xff]  ;;  %v985_v2 = vld [vmem:[%s1804_s0 + $0x18] sm:$0xff] }
   0x2   :  { %v79_v3 = vmul.f32 %v975_v0, %v975_v0  ;;  %v77_v4 = vmul.f32 %v980_v1, %v980_v1  ;;  %v80_v5 = vmul.f32 %v985_v2, %v985_v2  ;;  %v996_v6 = vld [vmem:[%s1804_s0 + $0x8] sm:$0xff]  ;;  %v1008_v9 = vld [vmem:[%s1804_s0 + $0x20] sm:$0xff]  ;;  %v1021_v16 = vld [vmem:[%s1804_s0 + $0x38] sm:$0xff] }
   0x3   :  { %v78_v7 = vmul.f32 %v996_v6, %v996_v6  ;;  %v1003_v8 = vld [vmem:[%s1804_s0 + $0x28] sm:$0xff]  ;;  %v81_v15 = vmul.f32 %v1008_v9, %v1008_v9  ;;  %v1026_v17 = vld [vmem:[%s1804_s0 + $0x30] sm:$0xff]  ;;  %v84_v20 = vmul.f32 %v1021_v16, %v1021_v16  ;;  %v1042_v23 = vld [vmem:[%s1804_s0 + $0x40] sm:$0xff] }
   0x4   :  { %v116_v10 = vsel %vm109_vm0, %v79_v3, 0.0  ;;  %v110_v11 = vsel %vm109_vm0, %v77_v4, 0.0  ;;  %v119_v12 = vsel %vm109_vm0, %v80_v5, 0.0  ;;  %v82_v14 = vmul.f32 %v1003_v8, %v1003_v8  ;;  %v1037_v22 = vld [vmem:[%s1804_s0 + $0x48] sm:$0xff]  ;;  %v1053_v28 = vld [vmem:[%s1804_s0 + $0x58] sm:$0xff]  ;;  %v1058_v29 = vld [vmem:[%s1804_s0 + $0x50] sm:$0xff] }
   0x5   :  { %117 = vadd.xlane.f32.xlu1 %v116_v10  ;;  %111 = vadd.xlane.f32.xlu0 %v110_v11  ;;  %v113_v13 = vsel %vm109_vm0, %v78_v7, 0.0  ;;  %v122_v19 = vsel %vm109_vm0, %v81_v15, 0.0  ;;  %v83_v21 = vmul.f32 %v1026_v17, %v1026_v17  ;;  %v131_v24 = vsel %vm109_vm0, %v84_v20, 0.0  ;;  %v1069_v34 = vld [vmem:[%s1804_s0 + $0x68] sm:$0xff]  ;;  %v1074_v35 = vld [vmem:[%s1804_s0 + $0x60] sm:$0xff]  ;;  %v1085_v40 = vld [vmem:[%s1804_s0 + $0x78] sm:$0xff] }
   0x6   :  { %v125_v18 = vsel %vm109_vm0, %v82_v14, 0.0  ;;  %v86_v26 = vmul.f32 %v1037_v22, %v1037_v22  ;;  %v85_v27 = vmul.f32 %v1042_v23, %v1042_v23  ;;  %v88_v32 = vmul.f32 %v1053_v28, %v1053_v28  ;;  %v1090_v41 = vld [vmem:[%s1804_s0 + $0x70] sm:$0xff]  ;;  %v1101_v46 = vld [vmem:[%s1804_s0 + $0x88] sm:$0xff]  ;;  %v1106_v47 = vld [vmem:[%s1804_s0 + $0x80] sm:$0xff] }
   0x7   :  { %v128_v25 = vsel %vm109_vm0, %v83_v21, 0.0  ;;  %v87_v33 = vmul.f32 %v1058_v29, %v1058_v29  ;;  %v90_v38 = vmul.f32 %v1069_v34, %v1069_v34  ;;  %v89_v39 = vmul.f32 %v1074_v35, %v1074_v35  ;;  %v1117_v52 = vld [vmem:[%s1804_s0 + $0x98] sm:$0xff]  ;;  %v1122_v53 = vld [vmem:[%s1804_s0 + $0x90] sm:$0xff]  ;;  %v1133_v58 = vld [vmem:[%s1804_s0 + $0xa8] sm:$0xff] }
   0x8   :  { %v137_v30 = vsel %vm109_vm0, %v86_v26, 0.0  ;;  %v134_v31 = vsel %vm109_vm0, %v85_v27, 0.0  ;;  %v143_v36 = vsel %vm109_vm0, %v88_v32, 0.0  ;;  %v92_v44 = vmul.f32 %v1085_v40, %v1085_v40  ;;  %v1138_v59 = vld [vmem:[%s1804_s0 + $0xa0] sm:$0xff]  ;;  %v1149_v3 = vld [vmem:[%s1804_s0 + $0xb8] sm:$0xff]  ;;  %v1154_v4 = vld [vmem:[%s1804_s0 + $0xb0] sm:$0xff] }
   0x9   :  { %120 = vadd.xlane.f32.xlu1 %v119_v12  ;;  %114 = vadd.xlane.f32.xlu0 %v113_v13  ;;  %v140_v37 = vsel %vm109_vm0, %v87_v33, 0.0  ;;  %v149_v42 = vsel %vm109_vm0, %v90_v38, 0.0  ;;  %v146_v43 = vsel %vm109_vm0, %v89_v39, 0.0  ;;  %v91_v45 = vmul.f32 %v1090_v41, %v1090_v41  ;;  %v1165_v12 = vld [vmem:[%s1804_s0 + $0xc8] sm:$0xff]  ;;  %v1170_v13 = vld [vmem:[%s1804_s0 + $0xc0] sm:$0xff]  ;;  %v1181_v20 = vld [vmem:[%s1804_s0 + $0xd8] sm:$0xff] }
   0xa   :  { %v155_v48 = vsel %vm109_vm0, %v92_v44, 0.0  ;;  %v94_v50 = vmul.f32 %v1101_v46, %v1101_v46  ;;  %v93_v51 = vmul.f32 %v1106_v47, %v1106_v47  ;;  %v96_v56 = vmul.f32 %v1117_v52, %v1117_v52  ;;  %v1186_v21 = vld [vmem:[%s1804_s0 + $0xd0] sm:$0xff]  ;;  %v1213_v38 = vld [vmem:[%s1804_s0 + $0xf8] sm:$0xff] }
   0xb   :  { %v152_v49 = vsel %vm109_vm0, %v91_v45, 0.0  ;;  %v95_v57 = vmul.f32 %v1122_v53, %v1122_v53  ;;  %v98_v62 = vmul.f32 %v1133_v58, %v1133_v58  ;;  %v97_v63 = vmul.f32 %v1138_v59, %v1138_v59  ;;  %v1218_v39 = vld [vmem:[%s1804_s0 + $0xf0] sm:$0xff] }
   0xc   :  { %v161_v54 = vsel %vm109_vm0, %v94_v50, 0.0  ;;  %v158_v55 = vsel %vm109_vm0, %v93_v51, 0.0  ;;  %v167_v60 = vsel %vm109_vm0, %v96_v56, 0.0  ;;  %v100_v10 = vmul.f32 %v1149_v3, %v1149_v3  ;;  %v1245_v56 = vld [vmem:[%s1805_s1 + $0x18] sm:$0xff] }
   0xd   :  { %126 = vadd.xlane.f32.xlu1 %v125_v18  ;;  %123 = vadd.xlane.f32.xlu0 %v122_v19  ;;  %v164_v61 = vsel %vm109_vm0, %v95_v57, 0.0  ;;  %v173_v5 = vsel %vm109_vm0, %v98_v62, 0.0  ;;  %v170_v7 = vsel %vm109_vm0, %v97_v63, 0.0  ;;  %v99_v11 = vmul.f32 %v1154_v4, %v1154_v4  ;;  %v1250_v57 = vld [vmem:[%s1805_s1 + $0x10] sm:$0xff] }
   0xe   :  { %v179_v14 = vsel %vm109_vm0, %v100_v10, 0.0  ;;  %v102_v18 = vmul.f32 %v1165_v12, %v1165_v12  ;;  %v101_v19 = vmul.f32 %v1170_v13, %v1170_v13  ;;  %v104_v26 = vmul.f32 %v1181_v20, %v1181_v20 }
   0xf   :  { %v176_v15 = vsel %vm109_vm0, %v99_v11, 0.0  ;;  %v103_v27 = vmul.f32 %v1186_v21, %v1186_v21  ;;  %v108_v44 = vmul.f32 %v1213_v38, %v1213_v38  ;;  %v107_v45 = vmul.f32 %v1218_v39, %v1218_v39 }
  0x10   :  { %v191_v32 = vsel %vm109_vm0, %v104_v26, 0.0  ;;  %v305_v62 = vmul.f32 %v1245_v56, %v1245_v56  ;;  %v304_v63 = vmul.f32 %v1250_v57, %v1250_v57 }
  0x11   :  { %132 = vadd.xlane.f32.xlu1 %v131_v24  ;;  %129 = vadd.xlane.f32.xlu0 %v128_v25  ;;  %v185_v24 = vsel %vm109_vm0, %v102_v18, 0.0  ;;  %v182_v25 = vsel %vm109_vm0, %v101_v19, 0.0  ;;  %v188_v33 = vsel %vm109_vm0, %v103_v27, 0.0  ;;  %v203_v50 = vsel %vm109_vm0, %v108_v44, 0.0  ;;  %v1277_v18 = vld [vmem:[%s1805_s1 + $0x38] sm:$0xff]  ;;  %v1282_v19 = vld [vmem:[%s1805_s1 + $0x30] sm:$0xff] }
  0x12   :  { %v200_v51 = vsel %vm109_vm0, %v107_v45, 0.0  ;;  %v344_v10 = vsel %vm334_vm1, %v305_v62, 0.0  ;;  %v341_v11 = vsel %vm334_vm1, %v304_v63, 0.0  ;;  %v309_v26 = vmul.f32 %v1277_v18, %v1277_v18  ;;  %v1309_v44 = vld [vmem:[%s1805_s1 + $0x58] sm:$0xff]  ;;  %v1314_v45 = vld [vmem:[%s1805_s1 + $0x50] sm:$0xff] }
  0x13   :  { %v308_v27 = vmul.f32 %v1282_v19, %v1282_v19 }
  0x15   :  { %138 = vadd.xlane.f32.xlu1 %v137_v30  ;;  %135 = vadd.xlane.f32.xlu0 %v134_v31  ;;  %v1197_v30 = vld [vmem:[%s1804_s0 + $0xe8] sm:$0xff]  ;;  %v1202_v31 = vld [vmem:[%s1804_s0 + $0xe0] sm:$0xff] }
  0x19   :  { %144 = vadd.xlane.f32.xlu1 %v143_v36  ;;  %141 = vadd.xlane.f32.xlu0 %v140_v37  ;;  %v106_v36 = vmul.f32 %v1197_v30, %v1197_v30  ;;  %v105_v37 = vmul.f32 %v1202_v31, %v1202_v31 }
  0x1d   :  { %150 = vadd.xlane.f32.xlu1 %v149_v42  ;;  %147 = vadd.xlane.f32.xlu0 %v146_v43  ;;  %v197_v42 = vsel %vm109_vm0, %v106_v36, 0.0  ;;  %v194_v43 = vsel %vm109_vm0, %v105_v37, 0.0  ;;  %v356_v36 = vsel %vm334_vm1, %v309_v26, 0.0  ;;  %v353_v37 = vsel %vm334_vm1, %v308_v27, 0.0 }
  0x21   :  { %156 = vadd.xlane.f32.xlu1 %v155_v48  ;;  %153 = vadd.xlane.f32.xlu0 %v152_v49  ;;  %v1229_v48 = vld [vmem:[%s1805_s1 + $0x8] sm:$0xff]  ;;  %v1234_v49 = vld [vmem:[%s1805_s1] sm:$0xff] }
  0x25   :  { %162 = vadd.xlane.f32.xlu1 %v161_v54  ;;  %159 = vadd.xlane.f32.xlu0 %v158_v55  ;;  %v303_v54 = vmul.f32 %v1229_v48, %v1229_v48  ;;  %v302_v55 = vmul.f32 %v1234_v49, %v1234_v49 }
  0x29   :  { %168 = vadd.xlane.f32.xlu1 %v167_v60  ;;  %165 = vadd.xlane.f32.xlu0 %v164_v61  ;;  %v338_v60 = vsel %vm334_vm1, %v303_v54, 0.0  ;;  %v335_v61 = vsel %vm334_vm1, %v302_v55, 0.0  ;;  %v313_v54 = vmul.f32 %v1309_v44, %v1309_v44  ;;  %v312_v55 = vmul.f32 %v1314_v45, %v1314_v45 }
  0x2b   :  { %v368_v62 = vsel %vm334_vm1, %v313_v54, 0.0  ;;  %v365_v63 = vsel %vm334_vm1, %v312_v55, 0.0  ;;  %v1373_v54 = vld [vmem:[%s1805_s1 + $0x98] sm:$0xff]  ;;  %v1378_v55 = vld [vmem:[%s1805_s1 + $0x90] sm:$0xff] }
  0x2c   :  { %1830 = vst [vmem:[#allocation6_spill] sm:$0xff] %v1373_v54  ;;  %1831 = vst [vmem:[#allocation7_spill] sm:$0xff] %v1378_v55 }
  0x2d   :  { %174 = vadd.xlane.f32.xlu1 %v173_v5  ;;  %171 = vadd.xlane.f32.xlu0 %v170_v7  ;;  %v1261_v5 = vld [vmem:[%s1805_s1 + $0x28] sm:$0xff]  ;;  %v1266_v7 = vld [vmem:[%s1805_s1 + $0x20] sm:$0xff] }
  0x31   :  { %180 = vadd.xlane.f32.xlu1 %v179_v14  ;;  %177 = vadd.xlane.f32.xlu0 %v176_v15  ;;  %v307_v14 = vmul.f32 %v1261_v5, %v1261_v5  ;;  %v306_v15 = vmul.f32 %v1266_v7, %v1266_v7 }
  0x35   :  { %186 = vadd.xlane.f32.xlu1 %v185_v24  ;;  %183 = vadd.xlane.f32.xlu0 %v182_v25  ;;  %v350_v24 = vsel %vm334_vm1, %v307_v14, 0.0  ;;  %v347_v25 = vsel %vm334_vm1, %v306_v15, 0.0  ;;  %v1341_v14 = vld [vmem:[%s1805_s1 + $0x78] sm:$0xff]  ;;  %v1346_v15 = vld [vmem:[%s1805_s1 + $0x70] sm:$0xff] }
  0x36   :  { %1826 = vst [vmem:[#allocation2_spill] sm:$0xff] %v1341_v14  ;;  %1827 = vst [vmem:[#allocation3_spill] sm:$0xff] %v1346_v15  ;;  %v317_v26 = vmul.f32 %v1341_v14, %v1341_v14  ;;  %v316_v27 = vmul.f32 %v1346_v15, %v1346_v15 }
  0x39   :  { %192 = vadd.xlane.f32.xlu1 %v191_v32  ;;  %189 = vadd.xlane.f32.xlu0 %v188_v33  ;;  %v1293_v32 = vld [vmem:[%s1805_s1 + $0x48] sm:$0xff]  ;;  %v1298_v33 = vld [vmem:[%s1805_s1 + $0x40] sm:$0xff] }
  0x3d   :  { %198 = vadd.xlane.f32.xlu1 %v197_v42  ;;  %195 = vadd.xlane.f32.xlu0 %v194_v43  ;;  %v311_v42 = vmul.f32 %v1293_v32, %v1293_v32  ;;  %v310_v43 = vmul.f32 %v1298_v33, %v1298_v33 }
  0x41   :  { %204 = vadd.xlane.f32.xlu1 %v203_v50  ;;  %201 = vadd.xlane.f32.xlu0 %v200_v51  ;;  %v362_v50 = vsel %vm334_vm1, %v311_v42, 0.0  ;;  %v359_v51 = vsel %vm334_vm1, %v310_v43, 0.0  ;;  %v380_v42 = vsel %vm334_vm1, %v317_v26, 0.0  ;;  %v377_v43 = vsel %vm334_vm1, %v316_v27, 0.0 }
  0x45   :  { %339 = vadd.xlane.f32.xlu1 %v338_v60  ;;  %336 = vadd.xlane.f32.xlu0 %v335_v61  ;;  %v1325_v60 = vld [vmem:[%s1805_s1 + $0x68] sm:$0xff]  ;;  %v1330_v61 = vld [vmem:[%s1805_s1 + $0x60] sm:$0xff] }
  0x49   :  { %345 = vadd.xlane.f32.xlu1 %v344_v10  ;;  %342 = vadd.xlane.f32.xlu0 %v341_v11  ;;  %v315_v10 = vmul.f32 %v1325_v60, %v1325_v60  ;;  %v314_v11 = vmul.f32 %v1330_v61, %v1330_v61 }
  0x4d   :  { %351 = vadd.xlane.f32.xlu1 %v350_v24  ;;  %348 = vadd.xlane.f32.xlu0 %v347_v25  ;;  %v374_v24 = vsel %vm334_vm1, %v315_v10, 0.0  ;;  %v371_v25 = vsel %vm334_vm1, %v314_v11, 0.0  ;;  %v321_v10 = vmul.f32 %v1373_v54, %v1373_v54  ;;  %v320_v11 = vmul.f32 %v1378_v55, %v1378_v55 }
  0x4f   :  { %v392_v26 = vsel %vm334_vm1, %v321_v10, 0.0  ;;  %v389_v27 = vsel %vm334_vm1, %v320_v11, 0.0 }
  0x51   :  { %357 = vadd.xlane.f32.xlu1 %v356_v36  ;;  %354 = vadd.xlane.f32.xlu0 %v353_v37  ;;  %v1357_v36 = vld [vmem:[%s1805_s1 + $0x88] sm:$0xff]  ;;  %v1362_v37 = vld [vmem:[%s1805_s1 + $0x80] sm:$0xff] }
  0x52   :  { %1828 = vst [vmem:[#allocation4_spill] sm:$0xff] %v1357_v36  ;;  %1829 = vst [vmem:[#allocation5_spill] sm:$0xff] %v1362_v37 }
  0x55   :  { %363 = vadd.xlane.f32.xlu1 %v362_v50  ;;  %360 = vadd.xlane.f32.xlu0 %v359_v51  ;;  %v319_v50 = vmul.f32 %v1357_v36, %v1357_v36  ;;  %v318_v51 = vmul.f32 %v1362_v37, %v1362_v37 }
  0x59   :  { %369 = vadd.xlane.f32.xlu1 %v368_v62  ;;  %366 = vadd.xlane.f32.xlu0 %v365_v63  ;;  %v386_v62 = vsel %vm334_vm1, %v319_v50, 0.0  ;;  %v383_v63 = vsel %vm334_vm1, %v318_v51, 0.0  ;;  %v1405_v50 = vld [vmem:[%s1805_s1 + $0xb8] sm:$0xff]  ;;  %v1410_v51 = vld [vmem:[%s1805_s1 + $0xb0] sm:$0xff] }
  0x5a   :  { %1834 = vst [vmem:[#allocation10_spill] sm:$0xff] %v1405_v50  ;;  %1835 = vst [vmem:[#allocation11_spill] sm:$0xff] %v1410_v51  ;;  %v325_v10 = vmul.f32 %v1405_v50, %v1405_v50  ;;  %v324_v11 = vmul.f32 %v1410_v51, %v1410_v51  ;;  %v1437_v50 = vld [vmem:[%s1805_s1 + $0xd8] sm:$0xff] }
  0x5b   :  { %1838 = vst [vmem:[#allocation14_spill] sm:$0xff] %v1437_v50 }
  0x5d   :  { %375 = vadd.xlane.f32.xlu1 %v374_v24  ;;  %372 = vadd.xlane.f32.xlu0 %v371_v25  ;;  %v1389_v24 = vld [vmem:[%s1805_s1 + $0xa8] sm:$0xff]  ;;  %v1394_v25 = vld [vmem:[%s1805_s1 + $0xa0] sm:$0xff] }
  0x5e   :  { %1832 = vst [vmem:[#allocation8_spill] sm:$0xff] %v1389_v24  ;;  %1833 = vst [vmem:[#allocation9_spill] sm:$0xff] %v1394_v25 }
  0x61   :  { %381 = vadd.xlane.f32.xlu1 %v380_v42  ;;  %378 = vadd.xlane.f32.xlu0 %v377_v43  ;;  %v323_v42 = vmul.f32 %v1389_v24, %v1389_v24  ;;  %v322_v43 = vmul.f32 %v1394_v25, %v1394_v25  ;;  %v1421_v25 = vld [vmem:[%s1805_s1 + $0xc8] sm:$0xff] }
  0x62   :  { %1836 = vst [vmem:[#allocation12_spill] sm:$0xff] %v1421_v25 }
  0x65   :  { %387 = vadd.xlane.f32.xlu1 %v386_v62  ;;  %384 = vadd.xlane.f32.xlu0 %v383_v63  ;;  %v398_v62 = vsel %vm334_vm1, %v323_v42, 0.0  ;;  %v395_v63 = vsel %vm334_vm1, %v322_v43, 0.0  ;;  %v401_v42 = vsel %vm334_vm1, %v324_v11, 0.0  ;;  %v327_v43 = vmul.f32 %v1421_v25, %v1421_v25  ;;  %v1453_v25 = vld [vmem:[%s1805_s1 + $0xe8] sm:$0xff] }
  0x66   :  { %v329_v11 = vmul.f32 %v1437_v50, %v1437_v50  ;;  %1840 = vst [vmem:[#allocation16_spill] sm:$0xff] %v1453_v25  ;;  %v1469_v50 = vld [vmem:[%s1805_s1 + $0xf8] sm:$0xff] }
  0x67   :  { %1842 = vst [vmem:[#allocation18_spill] sm:$0xff] %v1469_v50 }
  0x69   :  { %393 = vadd.xlane.f32.xlu1 %v392_v26  ;;  %390 = vadd.xlane.f32.xlu0 %v389_v27  ;;  %v1426_v26 = vld [vmem:[%s1805_s1 + $0xc0] sm:$0xff]  ;;  %v404_v27 = vsel %vm334_vm1, %v325_v10, 0.0 }
  0x6a   :  { %1837 = vst [vmem:[#allocation13_spill] sm:$0xff] %v1426_v26  ;;  %v326_v51 = vmul.f32 %v1426_v26, %v1426_v26 }
  0x6c   :  { %v407_v10 = vsel %vm334_vm1, %v326_v51, 0.0  ;;  %v416_v51 = vsel %vm334_vm1, %v329_v11, 0.0  ;;  %v333_v11 = vmul.f32 %v1469_v50, %v1469_v50 }
  0x6d   :  { %399 = vadd.xlane.f32.xlu1 %v398_v62  ;;  %396 = vadd.xlane.f32.xlu0 %v395_v63  ;;  %v1442_v62 = vld [vmem:[%s1805_s1 + $0xd0] sm:$0xff]  ;;  %v410_v63 = vsel %vm334_vm1, %v327_v43, 0.0  ;;  %v331_v43 = vmul.f32 %v1453_v25, %v1453_v25 }
  0x6e   :  { %1839 = vst [vmem:[#allocation15_spill] sm:$0xff] %v1442_v62  ;;  %v328_v26 = vmul.f32 %v1442_v62, %v1442_v62  ;;  %v428_v25 = vsel %vm334_vm1, %v333_v11, 0.0 }
  0x71   :  { %405 = vadd.xlane.f32.xlu1 %v404_v27  ;;  %402 = vadd.xlane.f32.xlu0 %v401_v42  ;;  %v1458_v27 = vld [vmem:[%s1805_s1 + $0xe0] sm:$0xff]  ;;  %v413_v42 = vsel %vm334_vm1, %v328_v26, 0.0  ;;  %v422_v26 = vsel %vm334_vm1, %v331_v43, 0.0 }
  0x72   :  { %1841 = vst [vmem:[#allocation17_spill] sm:$0xff] %v1458_v27  ;;  %v330_v62 = vmul.f32 %v1458_v27, %v1458_v27 }
  0x75   :  { %411 = vadd.xlane.f32.xlu1 %v410_v63  ;;  %408 = vadd.xlane.f32.xlu0 %v407_v10  ;;  %v1474_v63 = vld [vmem:[%s1805_s1 + $0xf0] sm:$0xff]  ;;  %v419_v10 = vsel %vm334_vm1, %v330_v62, 0.0 }
  0x76   :  { %1843 = vst [vmem:[#allocation19_spill] sm:$0xff] %v1474_v63  ;;  %v332_v27 = vmul.f32 %v1474_v63, %v1474_v63 }
  0x78   :  { %v425_v24 = vsel %vm334_vm1, %v332_v27, 0.0 }
  0x79   :  { %417 = vadd.xlane.f32.xlu1 %v416_v51  ;;  %414 = vadd.xlane.f32.xlu0 %v413_v42 }
  0x7d   :  { %423 = vadd.xlane.f32.xlu1 %v422_v26  ;;  %420 = vadd.xlane.f32.xlu0 %v419_v10 }
  0x81   :  { %429 = vadd.xlane.f32.xlu1 %v428_v25  ;;  %426 = vadd.xlane.f32.xlu0 %v425_v24 }
  0x92   :  { %v118_v51 = vpop.xlane.xlu1 %117  ;;  %v112_v42 = vpop.xlane.xlu0 %111 }
  0x93   :  { %v208_v55 = vmax.f32 %v118_v51, 1e-24  ;;  %v206_v43 = vmax.f32 %v112_v42, 1e-24 }
  0x95   :  { %824 = vrsqrt.f32 %v208_v55 }
  0x96   :  { %826 = vrsqrt.f32 %v206_v43  ;;  %v121_v62 = vpop.xlane.xlu1 %120  ;;  %v115_v54 = vpop.xlane.xlu0 %114 }
  0x97   :  { %v209_v50 = vmax.f32 %v121_v62, 1e-24  ;;  %v207_v37 = vmax.f32 %v115_v54, 1e-24 }
  0x99   :  { %828 = vrsqrt.f32 %v209_v50 }
  0x9a   :  { %830 = vrsqrt.f32 %v207_v37  ;;  %v127_v26 = vpop.xlane.xlu1 %126  ;;  %v124_v10 = vpop.xlane.xlu0 %123 }
  0x9b   :  { %v211_v63 = vmax.f32 %v127_v26, 1e-24  ;;  %v210_v11 = vmax.f32 %v124_v10, 1e-24 }
  0x9d   :  { %832 = vrsqrt.f32 %v211_v63 }
  0x9e   :  { %834 = vrsqrt.f32 %v210_v11  ;;  %v133_v25 = vpop.xlane.xlu1 %132  ;;  %v130_v24 = vpop.xlane.xlu0 %129 }
  0x9f   :  { %v825_v27 = vpop.eup %824  ;;  %v213_v36 = vmax.f32 %v133_v25, 1e-24  ;;  %v212_v51 = vmax.f32 %v130_v24, 1e-24 }
  0xa0   :  { %v827_v42 = vpop.eup %826  ;;  %v272_v55 = vmul.f32 %v825_v27, %v975_v0 }
  0xa1   :  { %v270_v43 = vmul.f32 %v827_v42, %v980_v1  ;;  %836 = vrsqrt.f32 %v213_v36 }
  0xa2   :  { %v529_v54 = vmul.f32 3.1622777, %v272_v55  ;;  %838 = vrsqrt.f32 %v212_v51  ;;  %v139_v37 = vpop.xlane.xlu1 %138  ;;  %v136_v50 = vpop.xlane.xlu0 %135 }
  0xa3   :  { %v829_v62 = vpop.eup %828  ;;  %v527_v26 = vmul.f32 3.1622777, %v270_v43  ;;  %v215_v63 = vmax.f32 %v139_v37, 1e-24  ;;  %v214_v10 = vmax.f32 %v136_v50, 1e-24 }
  0xa4   :  { %v831_v11 = vpop.eup %830  ;;  %v794_v15 = vpack.c.bf16 %v529_v54, %v529_v54  ;;  %v273_v25 = vmul.f32 %v829_v62, %v985_v2 }
  0xa5   :  { %v792_v24 = vpack.c.bf16 %v527_v26, %v527_v26  ;;  %v271_v14 = vmul.f32 %v831_v11, %v996_v6  ;;  %840 = vrsqrt.f32 %v215_v63 }
  0xa6   :  { %690 = vst.msk [vmem:[%s1806_s2 + $0x8] sm:$0xf] %vm687_vm2, %v794_v15  ;;  %v530_v0 = vmul.f32 3.1622777, %v273_v25  ;;  %842 = vrsqrt.f32 %v214_v10  ;;  %v145_v1 = vpop.xlane.xlu1 %144  ;;  %v142_v36 = vpop.xlane.xlu0 %141 }
  0xa7   :  { %v833_v27 = vpop.eup %832  ;;  %688 = vst.msk [vmem:[%s1806_s2] sm:$0xf] %vm687_vm2, %v792_v24  ;;  %v528_v2 = vmul.f32 3.1622777, %v271_v14  ;;  %v217_v51 = vmax.f32 %v145_v1, 1e-24 }
  0xa8   :  { %v216_v42 = vmax.f32 %v142_v36, 1e-24  ;;  %v835_v6 = vpop.eup %834  ;;  %v795_v55 = vpack.c.bf16 %v530_v0, %v530_v0  ;;  %v275_v43 = vmul.f32 %v833_v27, %v1003_v8 }
  0xa9   :  { %v793_v54 = vpack.c.bf16 %v528_v2, %v528_v2  ;;  %v274_v15 = vmul.f32 %v835_v6, %v1008_v9  ;;  %844 = vrsqrt.f32 %v217_v51 }
  0xaa   :  { %691 = vst.msk [vmem:[%s1806_s2 + $0xc] sm:$0xf] %vm687_vm2, %v795_v55  ;;  %v532_v37 = vmul.f32 3.1622777, %v275_v43  ;;  %846 = vrsqrt.f32 %v216_v42  ;;  %v151_v50 = vpop.xlane.xlu1 %150  ;;  %v148_v62 = vpop.xlane.xlu0 %147 }
  0xab   :  { %v837_v14 = vpop.eup %836  ;;  %689 = vst.msk [vmem:[%s1806_s2 + $0x4] sm:$0xf] %vm687_vm2, %v793_v54  ;;  %v531_v8 = vmul.f32 3.1622777, %v274_v15  ;;  %v219_v26 = vmax.f32 %v151_v50, 1e-24 }
  0xac   :  { %v218_v63 = vmax.f32 %v148_v62, 1e-24  ;;  %v839_v9 = vpop.eup %838  ;;  %v797_v10 = vpack.c.bf16 %v532_v37, %v532_v37  ;;  %v277_v11 = vmul.f32 %v837_v14, %v1021_v16 }
  0xad   :  { %v796_v25 = vpack.c.bf16 %v531_v8, %v531_v8  ;;  %v276_v24 = vmul.f32 %v839_v9, %v1026_v17  ;;  %848 = vrsqrt.f32 %v219_v26 }
  0xae   :  { %693 = vst.msk [vmem:[%s1806_s2 + $0x14] sm:$0xf] %vm687_vm2, %v797_v10  ;;  %v534_v0 = vmul.f32 3.1622777, %v277_v11  ;;  %850 = vrsqrt.f32 %v218_v63  ;;  %v157_v1 = vpop.xlane.xlu1 %156  ;;  %v154_v36 = vpop.xlane.xlu0 %153 }
  0xaf   :  { %v841_v27 = vpop.eup %840  ;;  %692 = vst.msk [vmem:[%s1806_s2 + $0x10] sm:$0xf] %vm687_vm2, %v796_v25  ;;  %v533_v16 = vmul.f32 3.1622777, %v276_v24  ;;  %v221_v2 = vmax.f32 %v157_v1, 1e-24 }
  0xb0   :  { %v220_v51 = vmax.f32 %v154_v36, 1e-24  ;;  %v843_v17 = vpop.eup %842  ;;  %v799_v42 = vpack.c.bf16 %v534_v0, %v534_v0  ;;  %v279_v6 = vmul.f32 %v841_v27, %v1037_v22 }
  0xb1   :  { %v798_v55 = vpack.c.bf16 %v533_v16, %v533_v16  ;;  %v278_v43 = vmul.f32 %v843_v17, %v1042_v23  ;;  %852 = vrsqrt.f32 %v221_v2 }
  0xb2   :  { %695 = vst.msk [vmem:[%s1806_s2 + $0x1c] sm:$0xf] %vm687_vm2, %v799_v42  ;;  %v536_v54 = vmul.f32 3.1622777, %v279_v6  ;;  %854 = vrsqrt.f32 %v220_v51  ;;  %v163_v15 = vpop.xlane.xlu1 %162  ;;  %v160_v37 = vpop.xlane.xlu0 %159 }
  0xb3   :  { %v845_v50 = vpop.eup %844  ;;  %694 = vst.msk [vmem:[%s1806_s2 + $0x18] sm:$0xf] %vm687_vm2, %v798_v55  ;;  %v535_v22 = vmul.f32 3.1622777, %v278_v43  ;;  %v223_v62 = vmax.f32 %v163_v15, 1e-24 }
  0xb4   :  { %v222_v14 = vmax.f32 %v160_v37, 1e-24  ;;  %v847_v23 = vpop.eup %846  ;;  %v801_v8 = vpack.c.bf16 %v536_v54, %v536_v54  ;;  %v281_v26 = vmul.f32 %v845_v50, %v1053_v28 }
  0xb5   :  { %v800_v63 = vpack.c.bf16 %v535_v22, %v535_v22  ;;  %v280_v9 = vmul.f32 %v847_v23, %v1058_v29  ;;  %856 = vrsqrt.f32 %v223_v62 }
  0xb6   :  { %697 = vst.msk [vmem:[%s1806_s2 + $0x24] sm:$0xf] %vm687_vm2, %v801_v8  ;;  %v538_v10 = vmul.f32 3.1622777, %v281_v26  ;;  %858 = vrsqrt.f32 %v222_v14  ;;  %v169_v11 = vpop.xlane.xlu1 %168  ;;  %v166_v25 = vpop.xlane.xlu0 %165 }
  0xb7   :  { %v849_v24 = vpop.eup %848  ;;  %696 = vst.msk [vmem:[%s1806_s2 + $0x20] sm:$0xf] %vm687_vm2, %v800_v63  ;;  %v537_v28 = vmul.f32 3.1622777, %v280_v9  ;;  %v225_v0 = vmax.f32 %v169_v11, 1e-24 }
  0xb8   :  { %v224_v1 = vmax.f32 %v166_v25, 1e-24  ;;  %v851_v29 = vpop.eup %850  ;;  %v803_v36 = vpack.c.bf16 %v538_v10, %v538_v10  ;;  %v283_v27 = vmul.f32 %v849_v24, %v1069_v34 }
  0xb9   :  { %v802_v16 = vpack.c.bf16 %v537_v28, %v537_v28  ;;  %v282_v2 = vmul.f32 %v851_v29, %v1074_v35  ;;  %860 = vrsqrt.f32 %v225_v0 }
  0xba   :  { %699 = vst.msk [vmem:[%s1806_s2 + $0x2c] sm:$0xf] %vm687_vm2, %v803_v36  ;;  %v540_v51 = vmul.f32 3.1622777, %v283_v27  ;;  %862 = vrsqrt.f32 %v224_v1  ;;  %v175_v17 = vpop.xlane.xlu1 %174  ;;  %v172_v42 = vpop.xlane.xlu0 %171 }
  0xbb   :  { %v853_v6 = vpop.eup %852  ;;  %698 = vst.msk [vmem:[%s1806_s2 + $0x28] sm:$0xf] %vm687_vm2, %v802_v16  ;;  %v539_v34 = vmul.f32 3.1622777, %v282_v2  ;;  %v227_v55 = vmax.f32 %v175_v17, 1e-24 }
  0xbc   :  { %v226_v43 = vmax.f32 %v172_v42, 1e-24  ;;  %v855_v35 = vpop.eup %854  ;;  %v805_v54 = vpack.c.bf16 %v540_v51, %v540_v51  ;;  %v285_v15 = vmul.f32 %v853_v6, %v1085_v40 }
  0xbd   :  { %v804_v37 = vpack.c.bf16 %v539_v34, %v539_v34  ;;  %v284_v50 = vmul.f32 %v855_v35, %v1090_v41  ;;  %864 = vrsqrt.f32 %v227_v55 }
  0xbe   :  { %701 = vst.msk [vmem:[%s1806_s2 + $0x34] sm:$0xf] %vm687_vm2, %v805_v54  ;;  %v542_v22 = vmul.f32 3.1622777, %v285_v15  ;;  %866 = vrsqrt.f32 %v226_v43  ;;  %v181_v62 = vpop.xlane.xlu1 %180  ;;  %v178_v14 = vpop.xlane.xlu0 %177 }
  0xbf   :  { %v857_v23 = vpop.eup %856  ;;  %700 = vst.msk [vmem:[%s1806_s2 + $0x30] sm:$0xf] %vm687_vm2, %v804_v37  ;;  %v541_v40 = vmul.f32 3.1622777, %v284_v50  ;;  %v229_v8 = vmax.f32 %v181_v62, 1e-24 }
  0xc0   :  { %v228_v26 = vmax.f32 %v178_v14, 1e-24  ;;  %v859_v41 = vpop.eup %858  ;;  %v807_v63 = vpack.c.bf16 %v542_v22, %v542_v22  ;;  %v287_v9 = vmul.f32 %v857_v23, %v1101_v46 }
  0xc1   :  { %v806_v10 = vpack.c.bf16 %v541_v40, %v541_v40  ;;  %v286_v11 = vmul.f32 %v859_v41, %v1106_v47  ;;  %868 = vrsqrt.f32 %v229_v8 }
  0xc2   :  { %703 = vst.msk [vmem:[%s1806_s2 + $0x3c] sm:$0xf] %vm687_vm2, %v807_v63  ;;  %v544_v25 = vmul.f32 3.1622777, %v287_v9  ;;  %870 = vrsqrt.f32 %v228_v26  ;;  %v187_v24 = vpop.xlane.xlu1 %186  ;;  %v184_v28 = vpop.xlane.xlu0 %183 }
  0xc3   :  { %v861_v0 = vpop.eup %860  ;;  %702 = vst.msk [vmem:[%s1806_s2 + $0x38] sm:$0xf] %vm687_vm2, %v806_v10  ;;  %v543_v46 = vmul.f32 3.1622777, %v286_v11  ;;  %v231_v1 = vmax.f32 %v187_v24, 1e-24 }
  0xc4   :  { %v230_v29 = vmax.f32 %v184_v28, 1e-24  ;;  %v863_v47 = vpop.eup %862  ;;  %v809_v36 = vpack.c.bf16 %v544_v25, %v544_v25  ;;  %v289_v27 = vmul.f32 %v861_v0, %v1117_v52 }
  0xc5   :  { %v808_v16 = vpack.c.bf16 %v543_v46, %v543_v46  ;;  %v288_v2 = vmul.f32 %v863_v47, %v1122_v53  ;;  %872 = vrsqrt.f32 %v231_v1 }
  0xc6   :  { %705 = vst.msk [vmem:[%s1806_s2 + $0x44] sm:$0xf] %vm687_vm2, %v809_v36  ;;  %v546_v51 = vmul.f32 3.1622777, %v289_v27  ;;  %874 = vrsqrt.f32 %v230_v29  ;;  %v193_v17 = vpop.xlane.xlu1 %192  ;;  %v190_v42 = vpop.xlane.xlu0 %189 }
  0xc7   :  { %v865_v6 = vpop.eup %864  ;;  %704 = vst.msk [vmem:[%s1806_s2 + $0x40] sm:$0xf] %vm687_vm2, %v808_v16  ;;  %v545_v52 = vmul.f32 3.1622777, %v288_v2  ;;  %v233_v34 = vmax.f32 %v193_v17, 1e-24 }
  0xc8   :  { %v232_v55 = vmax.f32 %v190_v42, 1e-24  ;;  %v867_v53 = vpop.eup %866  ;;  %v811_v43 = vpack.c.bf16 %v546_v51, %v546_v51  ;;  %v291_v35 = vmul.f32 %v865_v6, %v1133_v58 }
  0xc9   :  { %v810_v54 = vpack.c.bf16 %v545_v52, %v545_v52  ;;  %v290_v15 = vmul.f32 %v867_v53, %v1138_v59  ;;  %876 = vrsqrt.f32 %v233_v34 }
  0xca   :  { %707 = vst.msk [vmem:[%s1806_s2 + $0x4c] sm:$0xf] %vm687_vm2, %v811_v43  ;;  %v548_v37 = vmul.f32 3.1622777, %v291_v35  ;;  %878 = vrsqrt.f32 %v232_v55  ;;  %v199_v50 = vpop.xlane.xlu1 %198  ;;  %v196_v22 = vpop.xlane.xlu0 %195 }
  0xcb   :  { %v869_v62 = vpop.eup %868  ;;  %706 = vst.msk [vmem:[%s1806_s2 + $0x48] sm:$0xf] %vm687_vm2, %v810_v54  ;;  %v547_v58 = vmul.f32 3.1622777, %v290_v15  ;;  %v235_v14 = vmax.f32 %v199_v50, 1e-24 }
  0xcc   :  { %v234_v23 = vmax.f32 %v196_v22, 1e-24  ;;  %v871_v59 = vpop.eup %870  ;;  %v813_v40 = vpack.c.bf16 %v548_v37, %v548_v37  ;;  %v293_v8 = vmul.f32 %v869_v62, %v1149_v3 }
  0xcd   :  { %v812_v26 = vpack.c.bf16 %v547_v58, %v547_v58  ;;  %v292_v41 = vmul.f32 %v871_v59, %v1154_v4  ;;  %880 = vrsqrt.f32 %v235_v14 }
  0xce   :  { %709 = vst.msk [vmem:[%s1806_s2 + $0x54] sm:$0xf] %vm687_vm2, %v813_v40  ;;  %v550_v63 = vmul.f32 3.1622777, %v293_v8  ;;  %882 = vrsqrt.f32 %v234_v23  ;;  %v205_v9 = vpop.xlane.xlu1 %204  ;;  %v202_v10 = vpop.xlane.xlu0 %201 }
  0xcf   :  { %v873_v11 = vpop.eup %872  ;;  %708 = vst.msk [vmem:[%s1806_s2 + $0x50] sm:$0xf] %vm687_vm2, %v812_v26  ;;  %v549_v3 = vmul.f32 3.1622777, %v292_v41  ;;  %v237_v25 = vmax.f32 %v205_v9, 1e-24 }
  0xd0   :  { %v236_v24 = vmax.f32 %v202_v10, 1e-24  ;;  %v875_v4 = vpop.eup %874  ;;  %v815_v28 = vpack.c.bf16 %v550_v63, %v550_v63  ;;  %v295_v0 = vmul.f32 %v873_v11, %v1165_v12 }
  0xd1   :  { %v814_v46 = vpack.c.bf16 %v549_v3, %v549_v3  ;;  %v294_v1 = vmul.f32 %v875_v4, %v1170_v13  ;;  %884 = vrsqrt.f32 %v237_v25 }
  0xd2   :  { %711 = vst.msk [vmem:[%s1806_s2 + $0x5c] sm:$0xf] %vm687_vm2, %v815_v28  ;;  %v552_v29 = vmul.f32 3.1622777, %v295_v0  ;;  %886 = vrsqrt.f32 %v236_v24  ;;  %v340_v47 = vpop.xlane.xlu1 %339  ;;  %v337_v36 = vpop.xlane.xlu0 %336 }
  0xd3   :  { %v877_v27 = vpop.eup %876  ;;  %710 = vst.msk [vmem:[%s1806_s2 + $0x58] sm:$0xf] %vm687_vm2, %v814_v46  ;;  %v551_v12 = vmul.f32 3.1622777, %v294_v1  ;;  %v432_v16 = vmax.f32 %v340_v47, 1e-24 }
  0xd4   :  { %v431_v2 = vmax.f32 %v337_v36, 1e-24  ;;  %v879_v13 = vpop.eup %878  ;;  %v817_v51 = vpack.c.bf16 %v552_v29, %v552_v29  ;;  %v297_v17 = vmul.f32 %v877_v27, %v1181_v20 }
  0xd5   :  { %v816_v42 = vpack.c.bf16 %v551_v12, %v551_v12  ;;  %v296_v6 = vmul.f32 %v879_v13, %v1186_v21  ;;  %888 = vrsqrt.f32 %v432_v16 }
  0xd6   :  { %713 = vst.msk [vmem:[%s1806_s2 + $0x64] sm:$0xf] %vm687_vm2, %v817_v51  ;;  %v554_v52 = vmul.f32 3.1622777, %v297_v17  ;;  %890 = vrsqrt.f32 %v431_v2  ;;  %v346_v34 = vpop.xlane.xlu1 %345  ;;  %v343_v55 = vpop.xlane.xlu0 %342 }
  0xd7   :  { %v881_v53 = vpop.eup %880  ;;  %712 = vst.msk [vmem:[%s1806_s2 + $0x60] sm:$0xf] %vm687_vm2, %v816_v42  ;;  %v553_v20 = vmul.f32 3.1622777, %v296_v6  ;;  %v434_v43 = vmax.f32 %v346_v34, 1e-24 }
  0xd8   :  { %v433_v35 = vmax.f32 %v343_v55, 1e-24  ;;  %v883_v21 = vpop.eup %882  ;;  %v819_v54 = vpack.c.bf16 %v554_v52, %v554_v52  ;;  %v299_v15 = vmul.f32 %v881_v53, %v1197_v30 }
  0xd9   :  { %v818_v37 = vpack.c.bf16 %v553_v20, %v553_v20  ;;  %v298_v50 = vmul.f32 %v883_v21, %v1202_v31  ;;  %892 = vrsqrt.f32 %v434_v43 }
  0xda   :  { %715 = vst.msk [vmem:[%s1806_s2 + $0x6c] sm:$0xf] %vm687_vm2, %v819_v54  ;;  %v556_v22 = vmul.f32 3.1622777, %v299_v15  ;;  %894 = vrsqrt.f32 %v433_v35  ;;  %v352_v62 = vpop.xlane.xlu1 %351  ;;  %v349_v58 = vpop.xlane.xlu0 %348 }
  0xdb   :  { %v885_v14 = vpop.eup %884  ;;  %714 = vst.msk [vmem:[%s1806_s2 + $0x68] sm:$0xf] %vm687_vm2, %v818_v37  ;;  %v555_v30 = vmul.f32 3.1622777, %v298_v50  ;;  %v436_v23 = vmax.f32 %v352_v62, 1e-24 }
  0xdc   :  { %v435_v59 = vmax.f32 %v349_v58, 1e-24  ;;  %v887_v31 = vpop.eup %886  ;;  %v821_v40 = vpack.c.bf16 %v556_v22, %v556_v22  ;;  %v301_v8 = vmul.f32 %v885_v14, %v1213_v38 }
  0xdd   :  { %v820_v26 = vpack.c.bf16 %v555_v30, %v555_v30  ;;  %v300_v41 = vmul.f32 %v887_v31, %v1218_v39  ;;  %896 = vrsqrt.f32 %v436_v23 }
  0xde   :  { %717 = vst.msk [vmem:[%s1806_s2 + $0x74] sm:$0xf] %vm687_vm2, %v821_v40  ;;  %v558_v63 = vmul.f32 3.1622777, %v301_v8  ;;  %898 = vrsqrt.f32 %v435_v59  ;;  %v358_v9 = vpop.xlane.xlu1 %357  ;;  %v355_v10 = vpop.xlane.xlu0 %354 }
  0xdf   :  { %v889_v11 = vpop.eup %888  ;;  %716 = vst.msk [vmem:[%s1806_s2 + $0x70] sm:$0xf] %vm687_vm2, %v820_v26  ;;  %v557_v38 = vmul.f32 3.1622777, %v300_v41  ;;  %v438_v3 = vmax.f32 %v358_v9, 1e-24 }
  0xe0   :  { %v437_v25 = vmax.f32 %v355_v10, 1e-24  ;;  %v891_v39 = vpop.eup %890  ;;  %v823_v24 = vpack.c.bf16 %v558_v63, %v558_v63  ;;  %v496_v4 = vmul.f32 %v889_v11, %v1229_v48  ;;  %v1844_v11 = vld [vmem:[#allocation2_spill] sm:$0xff] }
  0xe1   :  { %v822_v28 = vpack.c.bf16 %v557_v38, %v557_v38  ;;  %v495_v0 = vmul.f32 %v891_v39, %v1234_v49  ;;  %900 = vrsqrt.f32 %v438_v3  ;;  %v1845_v38 = vld [vmem:[#allocation3_spill] sm:$0xff] }
  0xe2   :  { %719 = vst.msk [vmem:[%s1806_s2 + $0x7c] sm:$0xf] %vm687_vm2, %v823_v24  ;;  %902 = vrsqrt.f32 %v437_v25  ;;  %v364_v46 = vpop.xlane.xlu1 %363  ;;  %v361_v1 = vpop.xlane.xlu0 %360 }
  0xe3   :  { %721 = vst.msk [vmem:[%s1807_s3 + $0x8] sm:$0xff] %vm334_vm1, %v496_v4  ;;  %v893_v29 = vpop.eup %892  ;;  %720 = vst.msk [vmem:[%s1807_s3] sm:$0xff] %vm334_vm1, %v495_v0  ;;  %v440_v48 = vmax.f32 %v364_v46, 1e-24  ;;  %v439_v49 = vmax.f32 %v361_v1, 1e-24 }
  0xe4   :  { %718 = vst.msk [vmem:[%s1806_s2 + $0x78] sm:$0xf] %vm687_vm2, %v822_v28  ;;  %v895_v47 = vpop.eup %894  ;;  %v498_v36 = vmul.f32 %v893_v29, %v1245_v56  ;;  %v1846_v46 = vld [vmem:[#allocation4_spill] sm:$0xff]  ;;  %v1847_v29 = vld [vmem:[#allocation5_spill] sm:$0xff] }
  0xe5   :  { %v497_v27 = vmul.f32 %v895_v47, %v1250_v57  ;;  %904 = vrsqrt.f32 %v440_v48 }
  0xe6   :  { %723 = vst.msk [vmem:[%s1807_s3 + $0x18] sm:$0xff] %vm334_vm1, %v498_v36  ;;  %906 = vrsqrt.f32 %v439_v49  ;;  %v370_v12 = vpop.xlane.xlu1 %369  ;;  %v367_v16 = vpop.xlane.xlu0 %366 }
  0xe7   :  { %v897_v2 = vpop.eup %896  ;;  %722 = vst.msk [vmem:[%s1807_s3 + $0x10] sm:$0xff] %vm334_vm1, %v497_v27  ;;  %v442_v13 = vmax.f32 %v370_v12, 1e-24  ;;  %v441_v51 = vmax.f32 %v367_v16, 1e-24 }
  0xe8   :  { %v899_v56 = vpop.eup %898  ;;  %v500_v57 = vmul.f32 %v897_v2, %v1261_v5  ;;  %v1848_v2 = vld [vmem:[#allocation6_spill] sm:$0xff] }
  0xe9   :  { %v499_v17 = vmul.f32 %v899_v56, %v1266_v7  ;;  %908 = vrsqrt.f32 %v442_v13 }
  0xea   :  { %725 = vst.msk [vmem:[%s1807_s3 + $0x28] sm:$0xff] %vm334_vm1, %v500_v57  ;;  %910 = vrsqrt.f32 %v441_v51  ;;  %v376_v42 = vpop.xlane.xlu1 %375  ;;  %v373_v6 = vpop.xlane.xlu0 %372  ;;  %v1849_v51 = vld [vmem:[#allocation7_spill] sm:$0xff] }
  0xeb   :  { %v901_v52 = vpop.eup %900  ;;  %724 = vst.msk [vmem:[%s1807_s3 + $0x20] sm:$0xff] %vm334_vm1, %v499_v17  ;;  %v444_v34 = vmax.f32 %v376_v42, 1e-24  ;;  %v443_v55 = vmax.f32 %v373_v6, 1e-24 }
  0xec   :  { %v903_v5 = vpop.eup %902  ;;  %v502_v7 = vmul.f32 %v901_v52, %v1277_v18 }
  0xed   :  { %v501_v53 = vmul.f32 %v903_v5, %v1282_v19  ;;  %912 = vrsqrt.f32 %v444_v34 }
  0xee   :  { %727 = vst.msk [vmem:[%s1807_s3 + $0x38] sm:$0xff] %vm334_vm1, %v502_v7  ;;  %914 = vrsqrt.f32 %v443_v55  ;;  %v382_v20 = vpop.xlane.xlu1 %381  ;;  %v379_v43 = vpop.xlane.xlu0 %378  ;;  %v1850_v55 = vld [vmem:[#allocation8_spill] sm:$0xff]  ;;  %v1851_v7 = vld [vmem:[#allocation9_spill] sm:$0xff] }
  0xef   :  { %v905_v35 = vpop.eup %904  ;;  %726 = vst.msk [vmem:[%s1807_s3 + $0x30] sm:$0xff] %vm334_vm1, %v501_v53  ;;  %v446_v21 = vmax.f32 %v382_v20, 1e-24  ;;  %v445_v54 = vmax.f32 %v379_v43, 1e-24 }
  0xf0   :  { %v907_v18 = vpop.eup %906  ;;  %v504_v19 = vmul.f32 %v905_v35, %v1293_v32 }
  0xf1   :  { %v503_v15 = vmul.f32 %v907_v18, %v1298_v33  ;;  %916 = vrsqrt.f32 %v446_v21 }
  0xf2   :  { %729 = vst.msk [vmem:[%s1807_s3 + $0x48] sm:$0xff] %vm334_vm1, %v504_v19  ;;  %918 = vrsqrt.f32 %v445_v54  ;;  %v388_v37 = vpop.xlane.xlu1 %387  ;;  %v385_v50 = vpop.xlane.xlu0 %384  ;;  %v1852_v19 = vld [vmem:[#allocation10_spill] sm:$0xff] }
  0xf3   :  { %v909_v22 = vpop.eup %908  ;;  %728 = vst.msk [vmem:[%s1807_s3 + $0x40] sm:$0xff] %vm334_vm1, %v503_v15  ;;  %v448_v62 = vmax.f32 %v388_v37, 1e-24  ;;  %v447_v58 = vmax.f32 %v385_v50, 1e-24  ;;  %v1853_v37 = vld [vmem:[#allocation11_spill] sm:$0xff] }
  0xf4   :  { %v911_v32 = vpop.eup %910  ;;  %v506_v33 = vmul.f32 %v909_v22, %v1309_v44 }
  0xf5   :  { %v505_v14 = vmul.f32 %v911_v32, %v1314_v45  ;;  %920 = vrsqrt.f32 %v448_v62 }
  0xf6   :  { %731 = vst.msk [vmem:[%s1807_s3 + $0x58] sm:$0xff] %vm334_vm1, %v506_v33  ;;  %922 = vrsqrt.f32 %v447_v58  ;;  %v394_v30 = vpop.xlane.xlu1 %393  ;;  %v391_v23 = vpop.xlane.xlu0 %390 }
  0xf7   :  { %v913_v59 = vpop.eup %912  ;;  %730 = vst.msk [vmem:[%s1807_s3 + $0x50] sm:$0xff] %vm334_vm1, %v505_v14  ;;  %v450_v31 = vmax.f32 %v394_v30, 1e-24  ;;  %v449_v40 = vmax.f32 %v391_v23, 1e-24  ;;  %v1854_v30 = vld [vmem:[#allocation12_spill] sm:$0xff] }
  0xf8   :  { %v915_v44 = vpop.eup %914  ;;  %v508_v45 = vmul.f32 %v913_v59, %v1325_v60  ;;  %v1855_v59 = vld [vmem:[#allocation13_spill] sm:$0xff] }
  0xf9   :  { %v507_v8 = vmul.f32 %v915_v44, %v1330_v61  ;;  %924 = vrsqrt.f32 %v450_v31 }
  0xfa   :  { %733 = vst.msk [vmem:[%s1807_s3 + $0x68] sm:$0xff] %vm334_vm1, %v508_v45  ;;  %926 = vrsqrt.f32 %v449_v40  ;;  %v400_v26 = vpop.xlane.xlu1 %399  ;;  %v397_v41 = vpop.xlane.xlu0 %396  ;;  %v1856_v45 = vld [vmem:[#allocation14_spill] sm:$0xff] }
  0xfb   :  { %v917_v63 = vpop.eup %916  ;;  %732 = vst.msk [vmem:[%s1807_s3 + $0x60] sm:$0xff] %vm334_vm1, %v507_v8  ;;  %v452_v9 = vmax.f32 %v400_v26, 1e-24  ;;  %v451_v10 = vmax.f32 %v397_v41, 1e-24  ;;  %v1857_v26 = vld [vmem:[#allocation15_spill] sm:$0xff] }
  0xfc   :  { %v919_v60 = vpop.eup %918  ;;  %v510_v61 = vmul.f32 %v917_v63, %v1844_v11  ;;  %v1859_v11 = vld [vmem:[#allocation17_spill] sm:$0xff] }
  0xfd   :  { %v509_v3 = vmul.f32 %v919_v60, %v1845_v38  ;;  %928 = vrsqrt.f32 %v452_v9 }
  0xfe   :  { %735 = vst.msk [vmem:[%s1807_s3 + $0x78] sm:$0xff] %vm334_vm1, %v510_v61  ;;  %930 = vrsqrt.f32 %v451_v10  ;;  %v406_v25 = vpop.xlane.xlu1 %405  ;;  %v403_v39 = vpop.xlane.xlu0 %402  ;;  %v1858_v10 = vld [vmem:[#allocation16_spill] sm:$0xff] }
  0xff   :  { %v921_v24 = vpop.eup %920  ;;  %734 = vst.msk [vmem:[%s1807_s3 + $0x70] sm:$0xff] %vm334_vm1, %v509_v3  ;;  %v454_v4 = vmax.f32 %v406_v25, 1e-24  ;;  %v453_v28 = vmax.f32 %v403_v39, 1e-24  ;;  %v1860_v25 = vld [vmem:[#allocation18_spill] sm:$0xff] }
 0x100   :  { %v923_v0 = vpop.eup %922  ;;  %v512_v1 = vmul.f32 %v921_v24, %v1846_v46  ;;  %v1861_v24 = vld [vmem:[#allocation19_spill] sm:$0xff] }
 0x101   :  { %v511_v48 = vmul.f32 %v923_v0, %v1847_v29  ;;  %932 = vrsqrt.f32 %v454_v4 }
 0x102   :  { %737 = vst.msk [vmem:[%s1807_s3 + $0x88] sm:$0xff] %vm334_vm1, %v512_v1  ;;  %934 = vrsqrt.f32 %v453_v28  ;;  %v412_v49 = vpop.xlane.xlu1 %411  ;;  %v409_v47 = vpop.xlane.xlu0 %408 }
 0x103   :  { %v925_v36 = vpop.eup %924  ;;  %736 = vst.msk [vmem:[%s1807_s3 + $0x80] sm:$0xff] %vm334_vm1, %v511_v48  ;;  %v456_v27 = vmax.f32 %v412_v49, 1e-24  ;;  %v455_v12 = vmax.f32 %v409_v47, 1e-24 }
 0x104   :  { %v927_v16 = vpop.eup %926  ;;  %v514_v13 = vmul.f32 %v925_v36, %v1848_v2 }
 0x105   :  { %v513_v56 = vmul.f32 %v927_v16, %v1849_v51  ;;  %936 = vrsqrt.f32 %v456_v27 }
 0x106   :  { %739 = vst.msk [vmem:[%s1807_s3 + $0x98] sm:$0xff] %vm334_vm1, %v514_v13  ;;  %938 = vrsqrt.f32 %v455_v12  ;;  %v418_v57 = vpop.xlane.xlu1 %417  ;;  %v415_v17 = vpop.xlane.xlu0 %414 }
 0x107   :  { %v929_v42 = vpop.eup %928  ;;  %738 = vst.msk [vmem:[%s1807_s3 + $0x90] sm:$0xff] %vm334_vm1, %v513_v56  ;;  %v458_v6 = vmax.f32 %v418_v57, 1e-24  ;;  %v457_v52 = vmax.f32 %v415_v17, 1e-24 }
 0x108   :  { %v931_v34 = vpop.eup %930  ;;  %v516_v5 = vmul.f32 %v929_v42, %v1850_v55 }
 0x109   :  { %v515_v53 = vmul.f32 %v931_v34, %v1851_v7  ;;  %940 = vrsqrt.f32 %v458_v6 }
 0x10a   :  { %741 = vst.msk [vmem:[%s1807_s3 + $0xa8] sm:$0xff] %vm334_vm1, %v516_v5  ;;  %942 = vrsqrt.f32 %v457_v52  ;;  %v424_v20 = vpop.xlane.xlu1 %423  ;;  %v421_v43 = vpop.xlane.xlu0 %420 }
 0x10b   :  { %v933_v35 = vpop.eup %932  ;;  %740 = vst.msk [vmem:[%s1807_s3 + $0xa0] sm:$0xff] %vm334_vm1, %v515_v53  ;;  %v460_v21 = vmax.f32 %v424_v20, 1e-24  ;;  %v459_v54 = vmax.f32 %v421_v43, 1e-24 }
 0x10c   :  { %v935_v18 = vpop.eup %934  ;;  %v518_v15 = vmul.f32 %v933_v35, %v1852_v19 }
 0x10d   :  { %v517_v50 = vmul.f32 %v935_v18, %v1853_v37  ;;  %944 = vrsqrt.f32 %v460_v21 }
 0x10e   :  { %743 = vst.msk [vmem:[%s1807_s3 + $0xb8] sm:$0xff] %vm334_vm1, %v518_v15  ;;  %946 = vrsqrt.f32 %v459_v54  ;;  %v430_v22 = vpop.xlane.xlu1 %429  ;;  %v427_v62 = vpop.xlane.xlu0 %426 }
 0x10f   :  { %v937_v58 = vpop.eup %936  ;;  %742 = vst.msk [vmem:[%s1807_s3 + $0xb0] sm:$0xff] %vm334_vm1, %v517_v50  ;;  %v462_v32 = vmax.f32 %v430_v22, 1e-24  ;;  %v461_v33 = vmax.f32 %v427_v62, 1e-24 }
 0x110   :  { %v939_v14 = vpop.eup %938  ;;  %v520_v23 = vmul.f32 %v937_v58, %v1854_v30 }
 0x111   :  { %v519_v31 = vmul.f32 %v939_v14, %v1855_v59  ;;  %948 = vrsqrt.f32 %v462_v32 }
 0x112   :  { %745 = vst.msk [vmem:[%s1807_s3 + $0xc8] sm:$0xff] %vm334_vm1, %v520_v23  ;;  %950 = vrsqrt.f32 %v461_v33 }
 0x113   :  { %v941_v40 = vpop.eup %940  ;;  %744 = vst.msk [vmem:[%s1807_s3 + $0xc0] sm:$0xff] %vm334_vm1, %v519_v31 }
 0x114   :  { %v943_v44 = vpop.eup %942  ;;  %v522_v8 = vmul.f32 %v941_v40, %v1856_v45 }
 0x115   :  { %v521_v41 = vmul.f32 %v943_v44, %v1857_v26 }
 0x116   :  { %747 = vst.msk [vmem:[%s1807_s3 + $0xd8] sm:$0xff] %vm334_vm1, %v522_v8 }
 0x117   :  { %v945_v63 = vpop.eup %944  ;;  %746 = vst.msk [vmem:[%s1807_s3 + $0xd0] sm:$0xff] %vm334_vm1, %v521_v41 }
 0x118   :  { %v947_v9 = vpop.eup %946  ;;  %v524_v60 = vmul.f32 %v945_v63, %v1858_v10 }
 0x119   :  { %v523_v61 = vmul.f32 %v947_v9, %v1859_v11 }
 0x11a   :  { %749 = vst.msk [vmem:[%s1807_s3 + $0xe8] sm:$0xff] %vm334_vm1, %v524_v60 }
 0x11b   :  { %v949_v38 = vpop.eup %948  ;;  %748 = vst.msk [vmem:[%s1807_s3 + $0xe0] sm:$0xff] %vm334_vm1, %v523_v61 }
 0x11c   :  { %v951_v3 = vpop.eup %950  ;;  %v526_v39 = vmul.f32 %v949_v38, %v1860_v25 }
 0x11d   :  { %v525_v4 = vmul.f32 %v951_v3, %v1861_v24 }
 0x11e   :  { %751 = vst.msk [vmem:[%s1807_s3 + $0xf8] sm:$0xff] %vm334_vm1, %v526_v39 }
 0x11f   :  { %750 = vst.msk [vmem:[%s1807_s3 + $0xf0] sm:$0xff] %vm334_vm1, %v525_v4 }

// kernel: supcon_loss.3
= control target key start
LH: loop header
LB: loop body
LE: loop exit
PB: predicated region body
PF: predicated region fallthrough
CT: control target
= control target key end

     0   :  { %s2411_s18 = smov 0   ;;  %s2413_s19 = smov 0   ;;  %s3509_s0 = inlined_call_operand.vmem [shape: bf16[256,64], index: 0, kind: input, shape index: {}, may-alias: {0,1}]   ;;  %s3510_s1 = inlined_call_operand.vmem [shape: bf16[256,64], index: 1, kind: input, shape index: {}, may-alias: {0,1}]   ;;  %s3511_s2 = inlined_call_operand.vmem [shape: f32[256,16], index: 2, kind: input, shape index: {}, may-alias: {2,3}]   ;;  %s3512_s3 = inlined_call_operand.vmem [shape: f32[256,16], index: 3, kind: input, shape index: {}, may-alias: {2,3}]   ;;  %s3513_s4 = inlined_call_operand.vmem [shape: f32[1,256], index: 4, kind: output, shape index: {0}]   ;;  %s3514_s5 = inlined_call_operand.vmem [shape: f32[1,256], index: 5, kind: output, shape index: {1}]  }
   0x1   :  { %s2415_s20 = smov 0  }
   0x2 LB: > { %s28_s21 = sadd.s32 1, %s2372_s19  ;;  %p1849_p0 = scmp.ge.s32.totalorder %s2376_s20, 1  ;;  %s2376_s20 = sphi %s2415_s20, %s16_s20   ;;  %s2372_s19 = sphi %s2413_s19, %s3596_s19   ;;  %s2368_s18 = sphi %s2411_s18, %s3595_s18  }
   0x3   : > { %p30_p1 = scmp.ge.s32.totalorder %s28_s21, 2  ;;  %p236_p2 = scmp.lt.s32.totalorder %s2376_s20, 3 }
   0x5   : > { %s3598_s21 = smov (%p30_p1, %s28_s21), 0  ;;  %p237_p3 = pnand %p1849_p0, %p236_p2 }
   0x6   : > { %s1850_s22 = sshll.u32 (!%p237_p3), %s2368_s18, 4  ;;  %v2268_v0 = vld [vmem:[%s3510_s1] sm:$0xff] (!%p237_p3)   ;;  %vm487_vm0 = vcmask (!%p237_p3), 523264   ;;  %vm769_vm1 = vcmask (!%p237_p3), 130048   ;;  %v2269_v43 = vld [vmem:[%s3510_s1 + $0x8] sm:$0xff] (!%p237_p3)   ;;  %v2270_v44 = vld [vmem:[%s3510_s1 + $0x10] sm:$0xff] (!%p237_p3)  }
   0x7   : > { %240 = sbr.rel (%p237_p3) target bundleno = 506 (0x1fa), region = 36  ;;  %p281_p4 = scmp.lt.s32.totalorder (!%p237_p3), %s1850_s22, 31  ;;  %v721_v1 = vld [vmem:[%s3512_s3] sm:$0xff] (!%p237_p3)  ;;  %2065 = vmatprep.mubr.msk.bf16.mxu0 (!%p237_p3), %vm487_vm0, %v2268_v0  ;;  %vm2452_vm2 = vmpackc.low (!%p237_p3), %vm769_vm1, %vm769_vm1  ;;  %v722_v45 = vld [vmem:[%s3512_s3 + $0x8] sm:$0xff] (!%p237_p3)  ;;  %vm2380_vm6 = vmmov (!%p237_p3), 1  }
   0x8   : > { %2129 = vmatprep.mubr.msk.f32.mxu1 (!%p237_p3), %vm769_vm1, %v721_v1  ;;  %v723_v46 = vld [vmem:[%s3512_s3 + $0x10] sm:$0xff] (!%p237_p3)  ;;  %v724_v47 = vld [vmem:[%s3512_s3 + $0x18] sm:$0xff] (!%p237_p3)  ;;  %v725_v48 = vld [vmem:[%s3512_s3 + $0x20] sm:$0xff] (!%p237_p3)  ;;  %p304_p5 = scmp.lt.s32.totalorder (!%p237_p3), %s2368_s18, 1 }
   0x9   : > { %v2271_v49 = vld [vmem:[%s3510_s1 + $0x18] sm:$0xff] (!%p237_p3)   ;;  %v2272_v50 = vld [vmem:[%s3510_s1 + $0x20] sm:$0xff] (!%p237_p3)   ;;  %v726_v51 = vld [vmem:[%s3512_s3 + $0x28] sm:$0xff] (!%p237_p3) }
   0xa   : > { %v727_v52 = vld [vmem:[%s3512_s3 + $0x30] sm:$0xff] (!%p237_p3)  ;;  %v728_v53 = vld [vmem:[%s3512_s3 + $0x38] sm:$0xff] (!%p237_p3)  ;;  %v729_v54 = vld [vmem:[%s3512_s3 + $0x40] sm:$0xff] (!%p237_p3) }
   0xb   : > { %v2273_v55 = vld [vmem:[%s3510_s1 + $0x28] sm:$0xff] (!%p237_p3)   ;;  %v2274_v56 = vld [vmem:[%s3510_s1 + $0x30] sm:$0xff] (!%p237_p3)   ;;  %v732_v59 = vld [vmem:[%s3512_s3 + $0x58] sm:$0xff] (!%p237_p3) }
   0xc   : > { %v730_v57 = vld [vmem:[%s3512_s3 + $0x48] sm:$0xff] (!%p237_p3)  ;;  %v731_v58 = vld [vmem:[%s3512_s3 + $0x50] sm:$0xff] (!%p237_p3)  ;;  %v733_v60 = vld [vmem:[%s3512_s3 + $0x60] sm:$0xff] (!%p237_p3) }
   0xd   : > { %v2275_v61 = vld [vmem:[%s3510_s1 + $0x38] sm:$0xff] (!%p237_p3)   ;;  %v2276_v62 = vld [vmem:[%s3510_s1 + $0x40] sm:$0xff] (!%p237_p3)   ;;  %v734_v63 = vld [vmem:[%s3512_s3 + $0x68] sm:$0xff] (!%p237_p3) }
   0xe   : > { %s3600_s22 = smov (!%p281_p4, %s1850_s22), 31  ;;  %v735_v0 = vld [vmem:[%s3512_s3 + $0x70] sm:$0xff]  ;;  %v736_v1 = vld [vmem:[%s3512_s3 + $0x78] sm:$0xff]  ;;  %v737_v2 = vld [vmem:[%s3512_s3 + $0x80] sm:$0xff] }
   0xf   : > { %s1851_s27 = sshll.u32 %s3600_s22, 2  ;;  %s1853_s28 = sshll.u32 %s3600_s22, 3 }
  0x10   : > { %s2443_s6 = scalar_lea.vmem %s3509_s0, %s1851_s27  ;;  %s2448_s9 = scalar_lea.vmem %s3511_s2, %s1853_s28 }
  0x11   : > { %v2260_v3 = vld [vmem:[%s2443_s6] sm:$0xff]   ;;  %v754_v5 = vld [vmem:[%s2448_s9 + $0x8] sm:$0xff]  ;;  %v755_v9 = vld [vmem:[%s2448_s9 + $0x10] sm:$0xff]  ;;  %s1942_s22 = sshll.u32 %s2368_s18, 7  ;;  %s3602_s18 = smov (!%p304_p5, %s2368_s18), 1 }
  0x12   : > { %v753_v4 = vld [vmem:[%s2448_s9] sm:$0xff]  ;;  %2225 = vmatprep.subr.msk.bf16.mxu0 %vm487_vm0, %v2260_v3  ;;  %v537_v7 = vsel %vm487_vm0, %v2260_v3, 0  ;;  %v2261_v8 = vld [vmem:[%s2443_s6 + $0x8] sm:$0xff]   ;;  %v756_v10 = vld [vmem:[%s2448_s9 + $0x18] sm:$0xff]  ;;  %s309_s25 = scalar_lea.vmem %s3514_s5, %s3602_s18  ;;  %s306_s28 = scalar_lea.vmem %s3513_s4, %s3602_s18 }
  0x13   : > { %v2177_v6 = vpack.c.bf16 %v754_v5, %v753_v4  ;;  %2050 = vmatpush3.bf16.xpose.msra.mxu0 %v537_v7  ;;  %v2183_v11 = vpack.c.bf16 %v756_v10, %v755_v9  ;;  %v757_v12 = vld [vmem:[%s2448_s9 + $0x20] sm:$0xff]  ;;  %v758_v13 = vld [vmem:[%s2448_s9 + $0x28] sm:$0xff]  ;;  %v540_v14 = vsel %vm487_vm0, %v2261_v8, 0  ;;  %v2262_v15 = vld [vmem:[%s2443_s6 + $0x10] sm:$0xff]  }
  0x14   : > { %2226 = vmatprep.subr.msk.bf16.mxu0 %vm487_vm0, %v2261_v8  ;;  %v2189_v16 = vpack.c.bf16 %v758_v13, %v757_v12  ;;  %v759_v17 = vld [vmem:[%s2448_s9 + $0x30] sm:$0xff]  ;;  %v760_v18 = vld [vmem:[%s2448_s9 + $0x38] sm:$0xff]  ;;  %v543_v19 = vsel %vm487_vm0, %v2262_v15, 0  ;;  %v761_v22 = vld [vmem:[%s2448_s9 + $0x40] sm:$0xff] }
  0x15   : > { %2179 = vmatprep.subr.msk.bf16.mxu1 %vm2452_vm2, %v2177_v6  ;;  %v2263_v20 = vld [vmem:[%s2443_s6 + $0x18] sm:$0xff]   ;;  %v2195_v21 = vpack.c.bf16 %v760_v18, %v759_v17  ;;  %v762_v23 = vld [vmem:[%s2448_s9 + $0x48] sm:$0xff]  ;;  %v2264_v25 = vld [vmem:[%s2443_s6 + $0x20] sm:$0xff]  }
  0x16   : > { %2182 = vmatpush3.bf16.xpose.msk.msra.mxu1 %vm2452_vm2, %v2177_v6  ;;  %v546_v24 = vsel %vm487_vm0, %v2263_v20, 0  ;;  %v2201_v26 = vpack.c.bf16 %v762_v23, %v761_v22  ;;  %v763_v27 = vld [vmem:[%s2448_s9 + $0x50] sm:$0xff]  ;;  %v764_v28 = vld [vmem:[%s2448_s9 + $0x58] sm:$0xff]  ;;  %v549_v29 = vsel %vm487_vm0, %v2264_v25, 0  ;;  %v2265_v30 = vld [vmem:[%s2443_s6 + $0x28] sm:$0xff]  }
  0x17   : > { %2185 = vmatprep.subr.msk.bf16.mxu1 %vm2452_vm2, %v2183_v11  ;;  %v2207_v31 = vpack.c.bf16 %v764_v28, %v763_v27  ;;  %v765_v32 = vld [vmem:[%s2448_s9 + $0x60] sm:$0xff]  ;;  %v766_v33 = vld [vmem:[%s2448_s9 + $0x68] sm:$0xff]  ;;  %v552_v34 = vsel %vm487_vm0, %v2265_v30, 0  ;;  %v2266_v35 = vld [vmem:[%s2443_s6 + $0x30] sm:$0xff]   ;;  %v1140_v27 = vlaneseq }
  0x18   : > { %v2213_v36 = vpack.c.bf16 %v766_v33, %v765_v32  ;;  %v767_v37 = vld [vmem:[%s2448_s9 + $0x70] sm:$0xff]  ;;  %v768_v38 = vld [vmem:[%s2448_s9 + $0x78] sm:$0xff]  ;;  %v555_v39 = vsel %vm487_vm0, %v2266_v35, 0  ;;  %v2277_v3 = vld [vmem:[%s3510_s1 + $0x48] sm:$0xff]  }
  0x19   : > { %v2267_v40 = vld [vmem:[%s2443_s6 + $0x38] sm:$0xff]   ;;  %v2219_v41 = vpack.c.bf16 %v768_v38, %v767_v37  ;;  %v2278_v4 = vld [vmem:[%s3510_s1 + $0x50] sm:$0xff]   ;;  %v738_v5 = vld [vmem:[%s3512_s3 + $0x88] sm:$0xff]  ;;  %v2716_v28 = vshrl.u32 %v1140_v27, 7 }
  0x1a   : > { %v558_v42 = vsel %vm487_vm0, %v2267_v40, 0  ;;  %v739_v6 = vld [vmem:[%s3512_s3 + $0x90] sm:$0xff]  ;;  %v740_v7 = vld [vmem:[%s3512_s3 + $0x98] sm:$0xff]  ;;  %v741_v8 = vld [vmem:[%s3512_s3 + $0xa0] sm:$0xff] }
  0x1b   : > { %2052 = vmatpush3.bf16.xpose.msra.mxu0 %v540_v14  ;;  %v2279_v9 = vld [vmem:[%s3510_s1 + $0x58] sm:$0xff]   ;;  %v2280_v10 = vld [vmem:[%s3510_s1 + $0x60] sm:$0xff]   ;;  %v743_v12 = vld [vmem:[%s3512_s3 + $0xb0] sm:$0xff]  ;;  %v1144_v33 = vadd.s32 24, %v2716_v28 }
  0x1c   : > { %2227 = vmatprep.subr.msk.bf16.mxu0 %vm487_vm0, %v2262_v15  ;;  %v744_v13 = vld [vmem:[%s3512_s3 + $0xb8] sm:$0xff]  ;;  %v745_v14 = vld [vmem:[%s3512_s3 + $0xc0] sm:$0xff]  ;;  %v2281_v15 = vld [vmem:[%s3510_s1 + $0x68] sm:$0xff]  }
  0x1d   : > { %v746_v17 = vld [vmem:[%s3512_s3 + $0xc8] sm:$0xff]  ;;  %v747_v18 = vld [vmem:[%s3512_s3 + $0xd0] sm:$0xff] }
  0x1e   : > { %2188 = vmatpush3.bf16.xpose.msk.msra.mxu1 %vm2452_vm2, %v2183_v11  ;;  %v742_v11 = vld [vmem:[%s3512_s3 + $0xa8] sm:$0xff]  ;;  %v751_v23 = vld [vmem:[%s3512_s3 + $0xf0] sm:$0xff] }
  0x1f   : > { %2191 = vmatprep.subr.msk.bf16.mxu1 %vm2452_vm2, %v2189_v16  ;;  %v750_v22 = vld [vmem:[%s3512_s3 + $0xe8] sm:$0xff] }
  0x23   : > { %2054 = vmatpush3.bf16.xpose.msra.mxu0 %v543_v19  ;;  %v748_v19 = vld [vmem:[%s3512_s3 + $0xd8] sm:$0xff] }
  0x24   : > { %2228 = vmatprep.subr.msk.bf16.mxu0 %vm487_vm0, %v2263_v20  ;;  %v749_v20 = vld [vmem:[%s3512_s3 + $0xe0] sm:$0xff] }
  0x26   : > { %2194 = vmatpush3.bf16.xpose.msk.msra.mxu1 %vm2452_vm2, %v2189_v16  ;;  %v2282_v16 = vld [vmem:[%s3510_s1 + $0x70] sm:$0xff]  }
  0x27   : > { %2197 = vmatprep.subr.msk.bf16.mxu1 %vm2452_vm2, %v2195_v21 }
  0x2b   : > { %2056 = vmatpush3.bf16.xpose.msra.mxu0 %v546_v24  ;;  %v752_v24 = vld [vmem:[%s3512_s3 + $0xf8] sm:$0xff] }
  0x2c   : > { %2229 = vmatprep.subr.msk.bf16.mxu0 %vm487_vm0, %v2264_v25  ;;  %v2378_v25 = vmov 0.0  }
  0x2d   : > { %316 = vst [vmem:[#allocation3] sm:$0x1] %v2378_v25  ;;  %317 = vst [vmem:[#allocation4] sm:$0x1] %v2378_v25 }
  0x2e   : > { %2200 = vmatpush3.bf16.xpose.msk.msra.mxu1 %vm2452_vm2, %v2195_v21  ;;  %v2283_v21 = vld [vmem:[%s3510_s1 + $0x78] sm:$0xff]   ;;  %318 = vst [vmem:[#allocation5] sm:$0x1] %v2378_v25 }
  0x2f   : > { %2203 = vmatprep.subr.msk.bf16.mxu1 %vm2452_vm2, %v2201_v26 }
  0x33   : > { %2058 = vmatpush3.bf16.xpose.msra.mxu0 %v549_v29  ;;  %v1208_v29 = vand.u32 127, %v1140_v27 }
  0x34   : > { %2230 = vmatprep.subr.msk.bf16.mxu0 %vm487_vm0, %v2265_v30  ;;  %v1209_v30 = vstv %s1942_s22 }
  0x35   : > { %v2719_v32 = vadd.s32 %v1209_v30, %v1208_v29  ;;  %v1154_v29 = vadd.s32 104, %v2716_v28 }
  0x36   : > { %2206 = vmatpush3.bf16.xpose.msk.msra.mxu1 %vm2452_vm2, %v2201_v26  ;;  %v2379_v26 = vmov -inf  }
  0x37   : > { %2209 = vmatprep.subr.msk.bf16.mxu1 %vm2452_vm2, %v2207_v31  ;;  %315 = vst [vmem:[#allocation2] sm:$0x1] %v2379_v26  ;;  %vm1211_vm4 = vcmp.eq.s32.totalorder %v2716_v28, %v2719_v32  ;;  %vm1214_vm5 = vcmp.eq.s32.totalorder %v1144_v33, %v2719_v32  ;;  %v1153_v33 = vadd.s32 96, %v2716_v28 }
  0x38   : > { %vm1275_vm8 = vmxor %vm1211_vm4, %vm2380_vm6 }
  0x39   : > { %vm2740_vm10 = vmxor %vm1214_vm5, %vm2380_vm6 }
  0x3b   : > { %2060 = vmatpush3.bf16.xpose.msra.mxu0 %v552_v34  ;;  %v1143_v34 = vadd.s32 16, %v2716_v28 }
  0x3c   : > { %2231 = vmatprep.subr.msk.bf16.mxu0 %vm487_vm0, %v2266_v35 }
  0x3d   : > { %vm1213_vm11 = vcmp.eq.s32.totalorder %v1143_v34, %v2719_v32  ;;  %v2860_v34 = vadd.s32 120, %v2716_v28 }
  0x3e   : > { %2212 = vmatpush3.bf16.xpose.msk.msra.mxu1 %vm2452_vm2, %v2207_v31  ;;  %v1142_v31 = vadd.s32 8, %v2716_v28 }
  0x3f   : > { %2215 = vmatprep.subr.msk.bf16.mxu1 %vm2452_vm2, %v2213_v36 }
  0x40   : > { %vm1212_vm3 = vcmp.eq.s32.totalorder %v1142_v31, %v2719_v32 }
  0x41   : > { %vm1276_vm7 = vmxor %vm1212_vm3, %vm2380_vm6 }
  0x43   : > { %2062 = vmatpush3.bf16.xpose.msra.mxu0 %v555_v39 }
  0x44   : > { %2232 = vmatprep.subr.msk.bf16.mxu0 %vm487_vm0, %v2267_v40  ;;  %v1145_v40 = vadd.s32 32, %v2716_v28 }
  0x46   : > { %2218 = vmatpush3.bf16.xpose.msk.msra.mxu1 %vm2452_vm2, %v2213_v36  ;;  %v1146_v36 = vadd.s32 40, %v2716_v28 }
  0x47   : > { %2221 = vmatprep.subr.msk.bf16.mxu1 %vm2452_vm2, %v2219_v41 }
  0x48   : > { %vm1216_vm14 = vcmp.eq.s32.totalorder %v1146_v36, %v2719_v32  ;;  %v2863_v36 = vadd.s32 112, %v2716_v28 }
  0x49   : > { %vm2759_vm3 = vmxor %vm1216_vm14, %vm2380_vm6 }
  0x4b   : > { %2064 = vmatpush3.bf16.xpose.msra.mxu0 %v558_v42 }
  0x4e   : > { %2224 = vmatpush3.bf16.xpose.msk.msra.mxu1 %vm2452_vm2, %v2219_v41 }
  0x52   : > { %2066 = vmatmul.mubr.msk.bf16.vlgmr.msra.gmra.mrb[0].mxu0 %vm487_vm0, %v2269_v43 }
  0x53   : > { %2069 = vmatprep.mubr.msk.bf16.mxu0 %vm487_vm0, %v2270_v44  ;;  %v1148_v44 = vadd.s32 56, %v2716_v28 }
  0x55   : > { %2130 = vmatmul.mubr.msk.f32.vlgmr.msra.gmra.mrb[0].mxu1 %vm769_vm1, %v722_v45  ;;  %v1147_v45 = vadd.s32 48, %v2716_v28  ;;  %vm1218_vm4 = vcmp.eq.s32.totalorder %v1148_v44, %v2719_v32 }
  0x56   : > { %2132 = vmatprep.mubr.msk.f32.mxu1 %vm769_vm1, %v723_v46 }
  0x59   : > { %2133 = vmatmul.mubr.msk.f32.gmra.mrb[2].mxu1 %vm769_vm1, %v724_v47 }
  0x5a   : > { %2135 = vmatprep.mubr.msk.f32.mxu1 %vm769_vm1, %v725_v48  ;;  %2070 = vmatmul.mubr.msk.bf16.gmra.mrb[4].mxu0 %vm487_vm0, %v2271_v49 }
  0x5b   : > { %2073 = vmatprep.mubr.msk.bf16.mxu0 %vm487_vm0, %v2272_v50 }
  0x5d   : > { %2136 = vmatmul.mubr.msk.f32.gmra.mrb[4].mxu1 %vm769_vm1, %v726_v51 }
  0x5e   : > { %2138 = vmatprep.mubr.msk.f32.mxu1 %vm769_vm1, %v727_v52 }
  0x61   : > { %2139 = vmatmul.mubr.msk.f32.gmra.mrb[6].mxu1 %vm769_vm1, %v728_v53 }
  0x62   : > { %2141 = vmatprep.mubr.msk.f32.mxu1 %vm769_vm1, %v729_v54  ;;  %2074 = vmatmul.mubr.msk.bf16.gmra.mrb[8].mxu0 %vm487_vm0, %v2273_v55 }
  0x63   : > { %2077 = vmatprep.mubr.msk.bf16.mxu0 %vm487_vm0, %v2274_v56 }
  0x65   : > { %2142 = vmatmul.mubr.msk.f32.gmra.mrb[8].mxu1 %vm769_vm1, %v730_v57 }
  0x66   : > { %2144 = vmatprep.mubr.msk.f32.mxu1 %vm769_vm1, %v731_v58  ;;  %v1150_v58 = vadd.s32 72, %v2716_v28 }
  0x69   : > { %2145 = vmatmul.mubr.msk.f32.gmra.mrb[10].mxu1 %vm769_vm1, %v732_v59  ;;  %v1149_v59 = vadd.s32 64, %v2716_v28 }
  0x6a   : > { %2147 = vmatprep.mubr.msk.f32.mxu1 %vm769_vm1, %v733_v60  ;;  %2078 = vmatmul.mubr.msk.bf16.gmra.mrb[12].mxu0 %vm487_vm0, %v2275_v61 }
  0x6b   : > { %2081 = vmatprep.mubr.msk.bf16.mxu0 %vm487_vm0, %v2276_v62 }
  0x6d   : > { %2148 = vmatmul.mubr.msk.f32.gmra.mrb[12].mxu1 %vm769_vm1, %v734_v63  ;;  %v2785_v63 = vadd.s32 88, %v2716_v28 }
  0x6e   : > { %2150 = vmatprep.mubr.msk.f32.mxu1 %vm769_vm1, %v735_v0  ;;  %v2788_v0 = vadd.s32 80, %v2716_v28 }
  0x71   : > { %2151 = vmatmul.mubr.msk.f32.gmra.mrb[14].mxu1 %vm769_vm1, %v736_v1 }
  0x72   : > { %2153 = vmatprep.mubr.msk.f32.mxu1 %vm769_vm1, %v737_v2  ;;  %2082 = vmatmul.mubr.msk.bf16.gmra.mrb[16].mxu0 %vm487_vm0, %v2277_v3 }
  0x73   : > { %2085 = vmatprep.mubr.msk.bf16.mxu0 %vm487_vm0, %v2278_v4 }
  0x75   : > { %2154 = vmatmul.mubr.msk.f32.gmra.mrb[16].mxu1 %vm769_vm1, %v738_v5 }
  0x76   : > { %2156 = vmatprep.mubr.msk.f32.mxu1 %vm769_vm1, %v739_v6 }
  0x79   : > { %2157 = vmatmul.mubr.msk.f32.gmra.mrb[18].mxu1 %vm769_vm1, %v740_v7 }
  0x7a   : > { %2159 = vmatprep.mubr.msk.f32.mxu1 %vm769_vm1, %v741_v8  ;;  %2086 = vmatmul.mubr.msk.bf16.gmra.mrb[20].mxu0 %vm487_vm0, %v2279_v9 }
  0x7b   : > { %2089 = vmatprep.mubr.msk.bf16.mxu0 %vm487_vm0, %v2280_v10 }
  0x7d   : > { %2160 = vmatmul.mubr.msk.f32.gmra.mrb[20].mxu1 %vm769_vm1, %v742_v11 }
  0x7e   : > { %2162 = vmatprep.mubr.msk.f32.mxu1 %vm769_vm1, %v743_v12 }
  0x81   : > { %2163 = vmatmul.mubr.msk.f32.gmra.mrb[22].mxu1 %vm769_vm1, %v744_v13 }
  0x82   : > { %2165 = vmatprep.mubr.msk.f32.mxu1 %vm769_vm1, %v745_v14  ;;  %2090 = vmatmul.mubr.msk.bf16.gmra.mrb[24].mxu0 %vm487_vm0, %v2281_v15 }
  0x83   : > { %2093 = vmatprep.mubr.msk.bf16.mxu0 %vm487_vm0, %v2282_v16 }
  0x85   : > { %2166 = vmatmul.mubr.msk.f32.gmra.mrb[24].mxu1 %vm769_vm1, %v746_v17 }
  0x86   : > { %2168 = vmatprep.mubr.msk.f32.mxu1 %vm769_vm1, %v747_v18 }
  0x89   : > { %2169 = vmatmul.mubr.msk.f32.gmra.mrb[26].mxu1 %vm769_vm1, %v748_v19 }
  0x8a   : > { %2171 = vmatprep.mubr.msk.f32.mxu1 %vm769_vm1, %v749_v20  ;;  %2094 = vmatmul.mubr.msk.bf16.gmra.mrb[28].mxu0 %vm487_vm0, %v2283_v21  ;;  %vm2753_vm0 = vmxor %vm1213_vm11, %vm2380_vm6 }
  0x8d   : > { %2172 = vmatmul.mubr.msk.f32.gmra.mrb[28].mxu1 %vm769_vm1, %v750_v22 }
  0x8e   : > { %2174 = vmatprep.mubr.msk.f32.mxu1 %vm769_vm1, %v751_v23 }
  0x91   : > { %2175 = vmatmul.mubr.msk.f32.gmra.mrb[30].mxu1 %vm769_vm1, %v752_v24  ;;  %vm1215_vm1 = vcmp.eq.s32.totalorder %v1145_v40, %v2719_v32 }
 0x125   : > { %v2726_v35 = vpop.f32.mrb[0].mxu0 }
 0x126   : > { %v2731_v37 = vpop.f32.mrb[1].mxu0 }
 0x127   : > { %v2734_v39 = vpop.f32.mrb[2].mxu0 }
 0x128   : > { %v2131_v38 = vpop.f32.mrb[0].mxu1  ;;  %v2737_v42 = vpop.f32.mrb[3].mxu0 }
 0x129   : > { %vm1244_vm9 = vcmp.gt.f32.partialorder %v2131_v38, 0.8  ;;  %v980_v41 = vpop.f32.mrb[1].mxu1 }
 0x12a   : > { %vm1308_vm12 = vmand %vm1244_vm9, %vm1276_vm7  ;;  %vm1243_vm13 = vcmp.gt.f32.partialorder %v980_v41, 0.8 }
 0x12b   : > { %v1944_v46 = vsel %vm1308_vm12, 1.0, %v2378_v25  ;;  %vm1307_vm15 = vmand %vm1243_vm13, %vm1275_vm8  ;;  %v1527_v47 = vsel %vm1308_vm12, %v2737_v42, 0.0  ;;  %vm1217_vm8 = vcmp.eq.s32.totalorder %v1147_v45, %v2719_v32 }
 0x12c   : > { %v1526_v48 = vsel %vm1307_vm15, %v2731_v37, 0.0  ;;  %v1943_v49 = vsel %vm1307_vm15, 1.0, %v2378_v25  ;;  %v2134_v50 = vpop.f32.mrb[2].mxu1  ;;  %vm2809_vm12 = vmxor %vm1218_vm4, %vm2380_vm6  ;;  %vm1220_vm15 = vcmp.eq.s32.totalorder %v1150_v58, %v2719_v32  ;;  %vm1221_vm4 = vcmp.eq.s32.totalorder %v2788_v0, %v2719_v32 }
 0x12d   : > { %v1662_v52 = vadd.f32 %v1944_v46, %v1943_v49  ;;  %v1558_v53 = vadd.f32 %v1527_v47, %v1526_v48  ;;  %vm1246_vm2 = vcmp.gt.f32.partialorder %v2134_v50, 0.8  ;;  %v990_v54 = vpop.f32.mrb[3].mxu1  ;;  %v2770_v57 = vpop.f32.mrb[4].mxu0  ;;  %v1158_v0 = vadd.s32 136, %v2716_v28 }
 0x12e   : > { %vm2766_vm5 = vmand %vm1246_vm2, %vm2740_vm10  ;;  %vm1245_vm7 = vcmp.gt.f32.partialorder %v990_v54, 0.8  ;;  %v1342_v61 = vmax.f32 %v2726_v35, %v2770_v57  ;;  %v2782_v62 = vpop.f32.mrb[5].mxu0  ;;  %vm1222_vm2 = vcmp.eq.s32.totalorder %v2785_v63, %v2719_v32 }
 0x12f   : > { %v1529_v60 = vsel %vm2766_vm5, %v2734_v39, 0.0  ;;  %vm1309_vm9 = vmand %vm1245_vm7, %vm2753_vm0  ;;  %v1946_v1 = vsel %vm2766_vm5, 1.0, %v2378_v25  ;;  %v1340_v5 = vmax.f32 %v2731_v37, %v2782_v62  ;;  %v2800_v6 = vpop.f32.mrb[6].mxu0  ;;  %vm1219_vm0 = vcmp.eq.s32.totalorder %v1149_v59, %v2719_v32 }
 0x130   : > { %v1528_v2 = vsel %vm1309_vm9, %v2726_v35, 0.0  ;;  %v1945_v3 = vsel %vm1309_vm9, 1.0, %v2378_v25  ;;  %v2137_v4 = vpop.f32.mrb[4].mxu1  ;;  %vm1279_vm10 = vmxor %vm1215_vm1, %vm2380_vm6  ;;  %v1343_v10 = vmax.f32 %v2734_v39, %v2800_v6  ;;  %v2804_v11 = vpop.f32.mrb[7].mxu0 }
 0x131   : > { %v1559_v7 = vadd.f32 %v1558_v53, %v1528_v2  ;;  %v1663_v8 = vadd.f32 %v1945_v3, %v1662_v52  ;;  %vm1248_vm11 = vcmp.gt.f32.partialorder %v2137_v4, 0.8  ;;  %v1000_v9 = vpop.f32.mrb[5].mxu1  ;;  %v1341_v14 = vmax.f32 %v2737_v42, %v2804_v11  ;;  %vm2845_vm7 = vmxor %vm1220_vm15, %vm2380_vm6 }
 0x132   : > { %vm2815_vm13 = vmand %vm1248_vm11, %vm2759_vm3  ;;  %vm1247_vm14 = vcmp.gt.f32.partialorder %v1000_v9, 0.8 }
 0x133   : > { %vm1311_vm1 = vmand %vm1247_vm14, %vm1279_vm10  ;;  %v1560_v15 = vadd.f32 %v1559_v7, %v1529_v60  ;;  %v1664_v16 = vadd.f32 %v1946_v1, %v1663_v8  ;;  %v1531_v17 = vsel %vm2815_vm13, %v2804_v11, 0.0  ;;  %v1948_v18 = vsel %vm2815_vm13, 1.0, %v2378_v25 }
 0x134   : > { %v1530_v19 = vsel %vm1311_vm1, %v2782_v62, 0.0  ;;  %v1947_v20 = vsel %vm1311_vm1, 1.0, %v2378_v25  ;;  %v2140_v21 = vpop.f32.mrb[6].mxu1  ;;  %vm2836_vm3 = vmxor %vm1217_vm8, %vm2380_vm6  ;;  %vm1223_vm1 = vcmp.eq.s32.totalorder %v1153_v33, %v2719_v32 }
 0x135   : > { %v1561_v23 = vadd.f32 %v1560_v15, %v1530_v19  ;;  %v1665_v24 = vadd.f32 %v1947_v20, %v1664_v16  ;;  %vm1250_vm5 = vcmp.gt.f32.partialorder %v2140_v21, 0.8  ;;  %v1010_v26 = vpop.f32.mrb[7].mxu1  ;;  %v2856_v31 = vpop.f32.mrb[8].mxu0  ;;  %vm1283_vm11 = vmxor %vm1219_vm0, %vm2380_vm6  ;;  %vm1224_vm0 = vcmp.eq.s32.totalorder %v1154_v29, %v2719_v32 }
 0x136   : > { %vm2852_vm8 = vmand %vm1250_vm5, %vm2809_vm12  ;;  %vm1249_vm9 = vcmp.gt.f32.partialorder %v1010_v26, 0.8  ;;  %v2873_v44 = vpop.f32.mrb[9].mxu0  ;;  %v2878_v47 = vmax.f32 %v1342_v61, %v2856_v31  ;;  %v2950_v15 = vadd.s32 152, %v2716_v28  ;;  %v2953_v16 = vadd.s32 144, %v2716_v28 }
 0x137   : > { %v1562_v38 = vadd.f32 %v1561_v23, %v1531_v17  ;;  %v1533_v40 = vsel %vm2852_vm8, %v2800_v6, 0.0  ;;  %v1950_v41 = vsel %vm2852_vm8, 1.0, %v2378_v25  ;;  %vm1313_vm10 = vmand %vm1249_vm9, %vm2836_vm3  ;;  %v1666_v43 = vadd.f32 %v1948_v18, %v1665_v24  ;;  %v2886_v50 = vpop.f32.mrb[10].mxu0 }
 0x138   : > { %v1532_v45 = vsel %vm1313_vm10, %v2770_v57, 0.0  ;;  %v1949_v46 = vsel %vm1313_vm10, 1.0, %v2378_v25  ;;  %v2143_v48 = vpop.f32.mrb[8].mxu1  ;;  %v2881_v49 = vmax.f32 %v1340_v5, %v2873_v44  ;;  %v2889_v54 = vmax.f32 %v1343_v10, %v2886_v50  ;;  %v2891_v55 = vpop.f32.mrb[11].mxu0  ;;  %vm2897_vm13 = vmxor %vm1222_vm2, %vm2380_vm6 }
 0x139   : > { %v1563_v51 = vadd.f32 %v1562_v38, %v1532_v45  ;;  %v1667_v52 = vadd.f32 %v1949_v46, %v1666_v43  ;;  %vm1252_vm12 = vcmp.gt.f32.partialorder %v2143_v48, 0.8  ;;  %v1020_v53 = vpop.f32.mrb[9].mxu1  ;;  %v2908_v59 = vmax.f32 %v1341_v14, %v2891_v55  ;;  %vm2926_vm5 = vmxor %vm1221_vm4, %vm2380_vm6 }
 0x13a   : > { %vm2903_vm14 = vmand %vm1252_vm12, %vm2845_vm7  ;;  %vm1251_vm15 = vcmp.gt.f32.partialorder %v1020_v53, 0.8  ;;  %vm1226_vm2 = vcmp.eq.s32.totalorder %v2860_v34, %v2719_v32  ;;  %vm1225_vm7 = vcmp.eq.s32.totalorder %v2863_v36, %v2719_v32  ;;  %v1157_v14 = vadd.s32 128, %v2716_v28 }
 0x13b   : > { %vm1315_vm3 = vmand %vm1251_vm15, %vm1283_vm11  ;;  %v1564_v60 = vadd.f32 %v1563_v51, %v1533_v40  ;;  %v1668_v61 = vadd.f32 %v1950_v41, %v1667_v52  ;;  %v1535_v63 = vsel %vm2903_vm14, %v2891_v55, 0.0  ;;  %v1952_v1 = vsel %vm2903_vm14, 1.0, %v2378_v25 }
 0x13c   : > { %v1534_v2 = vsel %vm1315_vm3, %v2873_v44, 0.0  ;;  %v1951_v3 = vsel %vm1315_vm3, 1.0, %v2378_v25  ;;  %v2146_v4 = vpop.f32.mrb[10].mxu1  ;;  %vm2935_vm9 = vmxor %vm1224_vm0, %vm2380_vm6  ;;  %vm1227_vm3 = vcmp.eq.s32.totalorder %v1157_v14, %v2719_v32  ;;  %v1162_v36 = vadd.s32 168, %v2716_v28 }
 0x13d   : > { %v1565_v7 = vadd.f32 %v1564_v60, %v1534_v2  ;;  %v1669_v8 = vadd.f32 %v1951_v3, %v1668_v61  ;;  %vm1254_vm8 = vcmp.gt.f32.partialorder %v2146_v4, 0.8  ;;  %v1030_v9 = vpop.f32.mrb[11].mxu1  ;;  %v2946_v13 = vpop.f32.mrb[12].mxu0  ;;  %vm1287_vm12 = vmxor %vm1223_vm1, %vm2380_vm6  ;;  %vm1228_vm1 = vcmp.eq.s32.totalorder %v1158_v0, %v2719_v32 }
 0x13e   : > { %vm2942_vm4 = vmand %vm1254_vm8, %vm2897_vm13  ;;  %vm1253_vm10 = vcmp.gt.f32.partialorder %v1030_v9, 0.8  ;;  %v2963_v21 = vpop.f32.mrb[13].mxu0  ;;  %v1350_v24 = vmax.f32 %v2878_v47, %v2946_v13  ;;  %v3036_v2 = vadd.s32 184, %v2716_v28  ;;  %v3039_v3 = vadd.s32 176, %v2716_v28 }
 0x13f   : > { %v1566_v17 = vadd.f32 %v1565_v7, %v1535_v63  ;;  %v1537_v18 = vsel %vm2942_vm4, %v2886_v50, 0.0  ;;  %v1954_v19 = vsel %vm2942_vm4, 1.0, %v2378_v25  ;;  %vm1317_vm11 = vmand %vm1253_vm10, %vm2926_vm5  ;;  %v1670_v20 = vadd.f32 %v1952_v1, %v1669_v8  ;;  %v2974_v29 = vpop.f32.mrb[14].mxu0 }
 0x140   : > { %v1536_v22 = vsel %vm1317_vm11, %v2856_v31, 0.0  ;;  %v1953_v23 = vsel %vm1317_vm11, 1.0, %v2378_v25  ;;  %v2149_v26 = vpop.f32.mrb[12].mxu1  ;;  %v1348_v27 = vmax.f32 %v2881_v49, %v2963_v21  ;;  %v1351_v41 = vmax.f32 %v2889_v54, %v2974_v29  ;;  %v2978_v43 = vpop.f32.mrb[15].mxu0  ;;  %vm2984_vm14 = vmxor %vm1226_vm2, %vm2380_vm6 }
 0x141   : > { %v1567_v30 = vadd.f32 %v1566_v17, %v1536_v22  ;;  %v1671_v38 = vadd.f32 %v1953_v23, %v1670_v20  ;;  %vm1256_vm13 = vcmp.gt.f32.partialorder %v2149_v26, 0.8  ;;  %v1040_v40 = vpop.f32.mrb[13].mxu1  ;;  %v1349_v46 = vmax.f32 %v2908_v59, %v2978_v43  ;;  %vm3012_vm8 = vmxor %vm1225_vm7, %vm2380_vm6 }
 0x142   : > { %vm2990_vm15 = vmand %vm1256_vm13, %vm2935_vm9  ;;  %vm1255_vm0 = vcmp.gt.f32.partialorder %v1040_v40, 0.8  ;;  %vm1230_vm2 = vcmp.eq.s32.totalorder %v2950_v15, %v2719_v32  ;;  %vm1229_vm9 = vcmp.eq.s32.totalorder %v2953_v16, %v2719_v32  ;;  %v1161_v1 = vadd.s32 160, %v2716_v28 }
 0x143   : > { %vm1319_vm5 = vmand %vm1255_vm0, %vm1287_vm12  ;;  %v1568_v34 = vadd.f32 %v1567_v30, %v1537_v18  ;;  %v1672_v47 = vadd.f32 %v1954_v19, %v1671_v38  ;;  %v1539_v48 = vsel %vm2990_vm15, %v2978_v43, 0.0  ;;  %v1956_v49 = vsel %vm2990_vm15, 1.0, %v2378_v25 }
 0x144   : > { %v1538_v51 = vsel %vm1319_vm5, %v2963_v21, 0.0  ;;  %v1955_v52 = vsel %vm1319_vm5, 1.0, %v2378_v25  ;;  %v2152_v53 = vpop.f32.mrb[14].mxu1  ;;  %vm3021_vm10 = vmxor %vm1228_vm1, %vm2380_vm6  ;;  %v3088_v38 = vadd.s32 200, %v2716_v28  ;;  %v1165_v54 = vadd.s32 192, %v2716_v28 }
 0x145   : > { %v1569_v56 = vadd.f32 %v1568_v34, %v1538_v51  ;;  %v1673_v58 = vadd.f32 %v1955_v52, %v1672_v47  ;;  %vm1258_vm4 = vcmp.gt.f32.partialorder %v2152_v53, 0.8  ;;  %v1050_v59 = vpop.f32.mrb[15].mxu1  ;;  %v3032_v63 = vpop.f32.mrb[16].mxu0  ;;  %vm1291_vm13 = vmxor %vm1227_vm3, %vm2380_vm6  ;;  %vm1232_vm3 = vcmp.eq.s32.totalorder %v1162_v36, %v2719_v32 }
 0x146   : > { %vm3028_vm7 = vmand %vm1258_vm4, %vm2984_vm14  ;;  %vm1257_vm11 = vcmp.gt.f32.partialorder %v1050_v59, 0.8  ;;  %v3049_v9 = vpop.f32.mrb[17].mxu0  ;;  %v3054_v12 = vmax.f32 %v1350_v24, %v3032_v63  ;;  %vm1234_vm4 = vcmp.eq.s32.totalorder %v3036_v2, %v2719_v32  ;;  %v1170_v14 = vadd.s32 232, %v2716_v28 }
 0x147   : > { %v1570_v4 = vadd.f32 %v1569_v56, %v1539_v48  ;;  %v1541_v5 = vsel %vm3028_vm7, %v2974_v29, 0.0  ;;  %v1958_v7 = vsel %vm3028_vm7, 1.0, %v2378_v25  ;;  %vm1321_vm12 = vmand %vm1257_vm11, %vm3012_vm8  ;;  %v1674_v8 = vadd.f32 %v1956_v49, %v1673_v58  ;;  %v3062_v19 = vpop.f32.mrb[18].mxu0 }
 0x148   : > { %v1540_v10 = vsel %vm1321_vm12, %v2946_v13, 0.0  ;;  %v1957_v0 = vsel %vm1321_vm12, 1.0, %v2378_v25  ;;  %v2155_v17 = vpop.f32.mrb[16].mxu1  ;;  %v3057_v18 = vmax.f32 %v1348_v27, %v3049_v9  ;;  %v3065_v26 = vmax.f32 %v1351_v41, %v3062_v19  ;;  %v3067_v30 = vpop.f32.mrb[19].mxu0  ;;  %vm3073_vm15 = vmxor %vm1230_vm2, %vm2380_vm6 }
 0x149   : > { %v1571_v20 = vadd.f32 %v1570_v4, %v1540_v10  ;;  %v1675_v22 = vadd.f32 %v1957_v0, %v1674_v8  ;;  %vm1260_vm14 = vcmp.gt.f32.partialorder %v2155_v17, 0.8  ;;  %v1060_v23 = vpop.f32.mrb[17].mxu1  ;;  %v3084_v27 = vmax.f32 %v1349_v46, %v3067_v30  ;;  %vm3103_vm8 = vmxor %vm1229_vm9, %vm2380_vm6 }
 0x14a   : > { %vm3079_vm0 = vmand %vm1260_vm14, %vm3021_vm10  ;;  %vm1259_vm1 = vcmp.gt.f32.partialorder %v1060_v23, 0.8  ;;  %vm1231_vm2 = vcmp.eq.s32.totalorder %v1161_v1, %v2719_v32  ;;  %vm1233_vm9 = vcmp.eq.s32.totalorder %v3039_v3, %v2719_v32  ;;  %v3130_v56 = vadd.s32 216, %v2716_v28 }
 0x14b   : > { %vm1323_vm5 = vmand %vm1259_vm1, %vm1291_vm13  ;;  %v1572_v15 = vadd.f32 %v1571_v20, %v1541_v5  ;;  %v1676_v40 = vadd.f32 %v1958_v7, %v1675_v22  ;;  %v1543_v41 = vsel %vm3079_vm0, %v3067_v30, 0.0  ;;  %v1960_v45 = vsel %vm3079_vm0, 1.0, %v2378_v25 }
 0x14c   : > { %v1542_v33 = vsel %vm1323_vm5, %v3049_v9, 0.0  ;;  %v1959_v46 = vsel %vm1323_vm5, 1.0, %v2378_v25  ;;  %v2158_v34 = vpop.f32.mrb[18].mxu1  ;;  %vm3112_vm7 = vmxor %vm1232_vm3, %vm2380_vm6  ;;  %vm1236_vm13 = vcmp.eq.s32.totalorder %v3088_v38, %v2719_v32  ;;  %v1169_v38 = vadd.s32 224, %v2716_v28 }
 0x14d   : > { %v1573_v48 = vadd.f32 %v1572_v15, %v1542_v33  ;;  %v1677_v49 = vadd.f32 %v1959_v46, %v1676_v40  ;;  %vm1262_vm10 = vcmp.gt.f32.partialorder %v2158_v34, 0.8  ;;  %v1070_v51 = vpop.f32.mrb[19].mxu1  ;;  %v3124_v53 = vpop.f32.mrb[20].mxu0  ;;  %vm3161_vm1 = vmxor %vm1234_vm4, %vm2380_vm6  ;;  %vm1235_vm4 = vcmp.eq.s32.totalorder %v1165_v54, %v2719_v32 }
 0x14e   : > { %vm3120_vm11 = vmand %vm1262_vm10, %vm3073_vm15  ;;  %vm1261_vm12 = vcmp.gt.f32.partialorder %v1070_v51, 0.8  ;;  %v3140_v61 = vpop.f32.mrb[21].mxu0  ;;  %v1358_v7 = vmax.f32 %v3054_v12, %v3124_v53 }
 0x14f   : > { %v1574_v58 = vadd.f32 %v1573_v48, %v1543_v41  ;;  %v1545_v59 = vsel %vm3120_vm11, %v3062_v19, 0.0  ;;  %v1962_v60 = vsel %vm3120_vm11, 1.0, %v2378_v25  ;;  %vm1325_vm14 = vmand %vm1261_vm12, %vm3103_vm8  ;;  %v1678_v36 = vadd.f32 %v1960_v45, %v1677_v49  ;;  %v3151_v0 = vpop.f32.mrb[22].mxu0 }
 0x150   : > { %v1544_v4 = vsel %vm1325_vm14, %v3032_v63, 0.0  ;;  %v1961_v5 = vsel %vm1325_vm14, 1.0, %v2378_v25  ;;  %v2161_v8 = vpop.f32.mrb[20].mxu1  ;;  %v1356_v10 = vmax.f32 %v3057_v18, %v3140_v61  ;;  %vm1295_vm15 = vmxor %vm1231_vm2, %vm2380_vm6  ;;  %v1359_v23 = vmax.f32 %v3065_v26, %v3151_v0  ;;  %v3155_v24 = vpop.f32.mrb[23].mxu0 }
 0x151   : > { %v1575_v17 = vadd.f32 %v1574_v58, %v1544_v4  ;;  %v1679_v20 = vadd.f32 %v1961_v5, %v1678_v36  ;;  %vm1264_vm0 = vcmp.gt.f32.partialorder %v2161_v8, 0.8  ;;  %v1080_v22 = vpop.f32.mrb[21].mxu1  ;;  %v1357_v18 = vmax.f32 %v3084_v27, %v3155_v24  ;;  %vm3187_vm8 = vmxor %vm1233_vm9, %vm2380_vm6 }
 0x152   : > { %vm3167_vm3 = vmand %vm1264_vm0, %vm3112_vm7  ;;  %vm1263_vm5 = vcmp.gt.f32.partialorder %v1080_v22, 0.8  ;;  %v1167_v26 = vadd.s32 208, %v2716_v28  ;;  %vm1238_vm9 = vcmp.eq.s32.totalorder %v3130_v56, %v2719_v32 }
 0x153   : > { %vm1327_vm2 = vmand %vm1263_vm5, %vm1295_vm15  ;;  %v1576_v2 = vadd.f32 %v1575_v17, %v1545_v59  ;;  %v1680_v15 = vadd.f32 %v1962_v60, %v1679_v20  ;;  %v1547_v40 = vsel %vm3167_vm3, %v3155_v24, 0.0  ;;  %v1964_v41 = vsel %vm3167_vm3, 1.0, %v2378_v25 }
 0x154   : > { %v1546_v45 = vsel %vm1327_vm2, %v3140_v61, 0.0  ;;  %v1963_v33 = vsel %vm1327_vm2, 1.0, %v2378_v25  ;;  %v2164_v27 = vpop.f32.mrb[22].mxu1  ;;  %vm3196_vm7 = vmxor %vm1236_vm13, %vm2380_vm6  ;;  %vm1237_vm14 = vcmp.eq.s32.totalorder %v1167_v26, %v2719_v32  ;;  %vm1240_vm15 = vcmp.eq.s32.totalorder %v1170_v14, %v2719_v32 }
 0x155   : > { %v1577_v34 = vadd.f32 %v1576_v2, %v1546_v45  ;;  %v1681_v47 = vadd.f32 %v1963_v33, %v1680_v15  ;;  %vm1266_vm10 = vcmp.gt.f32.partialorder %v2164_v27, 0.8  ;;  %v1090_v48 = vpop.f32.mrb[23].mxu1  ;;  %v3208_v51 = vpop.f32.mrb[24].mxu0  ;;  %vm1299_vm0 = vmxor %vm1235_vm4, %vm2380_vm6 }
 0x156   : > { %vm3204_vm11 = vmand %vm1266_vm10, %vm3161_vm1  ;;  %vm1265_vm12 = vcmp.gt.f32.partialorder %v1090_v48, 0.8  ;;  %v3221_v60 = vpop.f32.mrb[25].mxu0  ;;  %v3226_v5 = vmax.f32 %v1358_v7, %v3208_v51 }
 0x157   : > { %v1578_v52 = vadd.f32 %v1577_v34, %v1547_v40  ;;  %v1549_v16 = vsel %vm3204_vm11, %v3151_v0, 0.0  ;;  %v1966_v58 = vsel %vm3204_vm11, 1.0, %v2378_v25  ;;  %vm1329_vm13 = vmand %vm1265_vm12, %vm3187_vm8  ;;  %v1682_v59 = vadd.f32 %v1964_v41, %v1681_v47  ;;  %v3234_v20 = vpop.f32.mrb[26].mxu0 }
 0x158   : > { %v1548_v36 = vsel %vm1329_vm13, %v3124_v53, 0.0  ;;  %v1965_v4 = vsel %vm1329_vm13, 1.0, %v2378_v25  ;;  %v2167_v8 = vpop.f32.mrb[24].mxu1  ;;  %v3229_v17 = vmax.f32 %v1356_v10, %v3221_v60  ;;  %v1363_v2 = vmax.f32 %v1359_v23, %v3234_v20  ;;  %v3237_v15 = vpop.f32.mrb[27].mxu0  ;;  %vm3243_vm3 = vmxor %vm1238_vm9, %vm2380_vm6 }
 0x159   : > { %v1579_v22 = vadd.f32 %v1578_v52, %v1548_v36  ;;  %v1683_v12 = vadd.f32 %v1965_v4, %v1682_v59  ;;  %vm1268_vm1 = vcmp.gt.f32.partialorder %v2167_v8, 0.8  ;;  %v1100_v1 = vpop.f32.mrb[25].mxu1  ;;  %v1361_v10 = vmax.f32 %v1357_v18, %v3237_v15  ;;  %vm3267_vm4 = vmxor %vm1237_vm14, %vm2380_vm6 }
 0x15a   : > { %vm3249_vm5 = vmand %vm1268_vm1, %vm3196_vm7  ;;  %vm1267_vm2 = vcmp.gt.f32.partialorder %v1100_v1, 0.8  ;;  %v1172_v23 = vadd.s32 248, %v2716_v28  ;;  %v1171_v40 = vadd.s32 240, %v2716_v28  ;;  %vm1239_vm9 = vcmp.eq.s32.totalorder %v1169_v38, %v2719_v32 }
 0x15b   : > { %vm1331_vm8 = vmand %vm1267_vm2, %vm1299_vm0  ;;  %v1580_v41 = vadd.f32 %v1579_v22, %v1549_v16  ;;  %v1684_v56 = vadd.f32 %v1966_v58, %v1683_v12  ;;  %v1551_v45 = vsel %vm3249_vm5, %v3237_v15, 0.0  ;;  %v1968_v33 = vsel %vm3249_vm5, 1.0, %v2378_v25 }
 0x15c   : > { %v1550_v27 = vsel %vm1331_vm8, %v3221_v60, 0.0  ;;  %v1967_v46 = vsel %vm1331_vm8, 1.0, %v2378_v25  ;;  %v2170_v18 = vpop.f32.mrb[26].mxu1  ;;  %vm3274_vm7 = vmxor %vm1240_vm15, %vm2380_vm6  ;;  %vm1242_vm14 = vcmp.eq.s32.totalorder %v1172_v23, %v2719_v32  ;;  %vm1241_vm13 = vcmp.eq.s32.totalorder %v1171_v40, %v2719_v32 }
 0x15d   : > { %v1581_v47 = vadd.f32 %v1580_v41, %v1550_v27  ;;  %v1685_v48 = vadd.f32 %v1967_v46, %v1684_v56  ;;  %vm1270_vm10 = vcmp.gt.f32.partialorder %v2170_v18, 0.8  ;;  %v1110_v49 = vpop.f32.mrb[27].mxu1  ;;  %v3285_v52 = vpop.f32.mrb[28].mxu0  ;;  %vm1303_vm0 = vmxor %vm1239_vm9, %vm2380_vm6 }
 0x15e   : > { %vm3281_vm11 = vmand %vm1270_vm10, %vm3243_vm3  ;;  %vm1269_vm12 = vcmp.gt.f32.partialorder %v1110_v49, 0.8  ;;  %v3297_v36 = vpop.f32.mrb[29].mxu0  ;;  %v1366_v22 = vmax.f32 %v3226_v5, %v3285_v52 }
 0x15f   : > { %v1582_v14 = vadd.f32 %v1581_v47, %v1551_v45  ;;  %v1553_v16 = vsel %vm3281_vm11, %v3234_v20, 0.0  ;;  %v1970_v58 = vsel %vm3281_vm11, 1.0, %v2378_v25  ;;  %vm1333_vm15 = vmand %vm1269_vm12, %vm3267_vm4  ;;  %v1686_v59 = vadd.f32 %v1968_v33, %v1685_v48  ;;  %v3308_v7 = vpop.f32.mrb[30].mxu0 }
 0x160   : > { %v1552_v4 = vsel %vm1333_vm15, %v3208_v51, 0.0  ;;  %v1969_v8 = vsel %vm1333_vm15, 1.0, %v2378_v25  ;;  %v2173_v12 = vpop.f32.mrb[28].mxu1  ;;  %v1364_v1 = vmax.f32 %v3229_v17, %v3297_v36  ;;  %v1367_v45 = vmax.f32 %v1363_v2, %v3308_v7  ;;  %v3311_v33 = vpop.f32.mrb[31].mxu0  ;;  %vm3316_vm3 = vmxor %vm1242_vm14, %vm2380_vm6 }
 0x161   : > { %v1583_v54 = vadd.f32 %v1582_v14, %v1552_v4  ;;  %v1687_v41 = vadd.f32 %v1969_v8, %v1686_v59  ;;  %vm1272_vm1 = vcmp.gt.f32.partialorder %v2173_v12, 0.8  ;;  %v1120_v56 = vpop.f32.mrb[29].mxu1  ;;  %v1365_v17 = vmax.f32 %v1361_v10, %v3311_v33  ;;  %vm1305_vm4 = vmxor %vm1241_vm13, %vm2380_vm6 }
 0x162   : > { %vm3322_vm5 = vmand %vm1272_vm1, %vm3274_vm7  ;;  %vm1271_vm2 = vcmp.gt.f32.partialorder %v1120_v56, 0.8  ;;  %v1369_v46 = vmax.f32 %v1366_v22, %v1367_v45 }
 0x163   : > { %v1972_v2 = vsel %vm3322_vm5, 1.0, %v2378_v25  ;;  %vm1335_vm8 = vmand %vm1271_vm2, %vm1303_vm0  ;;  %v1584_v27 = vadd.f32 %v1583_v54, %v1553_v16  ;;  %v1688_v23 = vadd.f32 %v1970_v58, %v1687_v41  ;;  %v1368_v47 = vmax.f32 %v1364_v1, %v1365_v17 }
 0x164   : > { %v1554_v18 = vsel %vm1335_vm8, %v3297_v36, 0.0  ;;  %v1971_v34 = vsel %vm1335_vm8, 1.0, %v2378_v25  ;;  %v1555_v48 = vsel %vm3322_vm5, %v3311_v33, 0.0  ;;  %v2176_v49 = vpop.f32.mrb[30].mxu1 }
 0x165   : > { %v1585_v10 = vadd.f32 %v1584_v27, %v1554_v18  ;;  %v1689_v3 = vadd.f32 %v1971_v34, %v1688_v23  ;;  %vm1274_vm10 = vcmp.gt.f32.partialorder %v2176_v49, 0.8  ;;  %v1130_v26 = vpop.f32.mrb[31].mxu1  ;;  %v1370_v14 = vmax.f32 %v1368_v47, %v1369_v46 }
 0x166   : > { %vm1338_vm7 = vmand %vm1274_vm10, %vm3316_vm3  ;;  %vm1273_vm9 = vcmp.gt.f32.partialorder %v1130_v26, 0.8  ;;  %v1384_v34 = vsub.s32 0, %v2716_v28 }
 0x167   : > { %v1586_v16 = vadd.f32 %v1585_v10, %v1555_v48  ;;  %v1557_v58 = vsel %vm1338_vm7, %v3308_v7, 0.0  ;;  %vm1337_vm11 = vmand %vm1273_vm9, %vm1305_vm4  ;;  %v1690_v59 = vadd.f32 %v1972_v2, %v1689_v3  ;;  %v1371_v4 = vrot.slane %v1370_v14, 4  ;;  %v3344_v2 = vld [vmem:[#allocation2] sm:$0x1] }
 0x168   : > { %v1974_v8 = vsel %vm1338_vm7, 1.0, %v2378_v25  ;;  %v1556_v32 = vsel %vm1337_vm11, %v3285_v52, 0.0  ;;  %v1973_v40 = vsel %vm1337_vm11, 1.0, %v2378_v25 }
 0x169   : > { %v1587_v22 = vadd.f32 %v1586_v16, %v1556_v32  ;;  %v1691_v12 = vadd.f32 %v1973_v40, %v1690_v59  ;;  %v1372_v1 = vmax.f32 %v1370_v14, %v1371_v4 }
 0x16b   : > { %v1588_v54 = vadd.f32 %v1587_v22, %v1557_v58  ;;  %v1692_v41 = vadd.f32 %v1974_v8, %v1691_v12  ;;  %v1373_v56 = vrot.slane %v1372_v1, 2 }
 0x16d   : > { %v1589_v45 = vrot.slane %v1588_v54, 4  ;;  %v1693_v5 = vrot.slane %v1692_v41, 4  ;;  %v1374_v38 = vmax.f32 %v1372_v1, %v1373_v56 }
 0x16f   : > { %v1590_v17 = vadd.f32 %v1589_v45, %v1588_v54  ;;  %v1375_v27 = vrot.slane %v1374_v38, 1  ;;  %v1694_v23 = vadd.f32 %v1693_v5, %v1692_v41  ;;  %v1525_v45 = vld [vmem:[#allocation4] sm:$0x1] }
 0x171   : > { %v1591_v46 = vrot.slane %v1590_v17, 2  ;;  %v1376_v18 = vmax.f32 %v1374_v38, %v1375_v27  ;;  %v1695_v48 = vrot.slane %v1694_v23, 2 }
 0x173   : > { %v1592_v47 = vadd.f32 %v1591_v46, %v1590_v17  ;;  %v3348_v25 = vmax.f32 %v3344_v2, %v1376_v18  ;;  %v1696_v16 = vadd.f32 %v1695_v48, %v1694_v23  ;;  %v1597_v23 = vld [vmem:[#allocation5] sm:$0x1] }
 0x175   : > { %v3353_v10 = vrot.slane %v3348_v25, %v1384_v34  ;;  %1524 = vst [vmem:[#allocation2] sm:$0x1] %v3348_v25  ;;  %v1593_v3 = vrot.slane %v1592_v47, 1  ;;  %v1697_v49 = vrot.slane %v1696_v16, 1 }
 0x177   : > { %v1387_v26 = vsub.f32 %v2731_v37, %v3353_v10  ;;  %v1388_v28 = vsub.f32 %v2737_v42, %v3353_v10  ;;  %v1389_v14 = vsub.f32 %v2726_v35, %v3353_v10  ;;  %v1390_v58 = vsub.f32 %v2734_v39, %v3353_v10 }
 0x178   : > { %v1391_v59 = vsub.f32 %v2782_v62, %v3353_v10  ;;  %v1392_v4 = vsub.f32 %v2804_v11, %v3353_v10  ;;  %v1393_v8 = vsub.f32 %v2770_v57, %v3353_v10  ;;  %v1394_v37 = vsub.f32 %v2800_v6, %v3353_v10 }
 0x179   : > { %v1395_v42 = vsub.f32 %v2873_v44, %v3353_v10  ;;  %v1396_v35 = vsub.f32 %v2891_v55, %v3353_v10  ;;  %v1594_v32 = vadd.f32 %v1593_v3, %v1592_v47  ;;  %v1397_v39 = vsub.f32 %v2856_v31, %v3353_v10 }
 0x17a   : > { %v1398_v62 = vsub.f32 %v2886_v50, %v3353_v10  ;;  %v1399_v11 = vsub.f32 %v2963_v21, %v3353_v10  ;;  %v1400_v57 = vsub.f32 %v2978_v43, %v3353_v10  ;;  %v1401_v6 = vsub.f32 %v2946_v13, %v3353_v10 }
 0x17b   : > { %v1402_v44 = vsub.f32 %v2974_v29, %v3353_v10  ;;  %v1403_v55 = vsub.f32 %v3049_v9, %v3353_v10  ;;  %v1404_v31 = vsub.f32 %v3067_v30, %v3353_v10  ;;  %v1405_v50 = vsub.f32 %v3032_v63, %v3353_v10 }
 0x17c   : > { %v1406_v40 = vsub.f32 %v3062_v19, %v3353_v10  ;;  %v1407_v22 = vsub.f32 %v3140_v61, %v3353_v10  ;;  %v1408_v12 = vsub.f32 %v3155_v24, %v3353_v10  ;;  %v1409_v1 = vsub.f32 %v3124_v53, %v3353_v10 }
 0x17d   : > { %v1410_v54 = vsub.f32 %v3151_v0, %v3353_v10  ;;  %v1411_v41 = vsub.f32 %v3221_v60, %v3353_v10  ;;  %v1412_v56 = vsub.f32 %v3237_v15, %v3353_v10  ;;  %v1418_v46 = vsub.f32 %v3308_v7, %v3353_v10 }
 0x17e   : > { %v1419_v18 = vmul.f32 1.442695, %v1387_v26  ;;  %v1421_v34 = vmul.f32 1.442695, %v1388_v28  ;;  %v1423_v47 = vmul.f32 1.442695, %v1389_v14  ;;  %v1595_v48 = vadd.f32 %v1594_v32, %v1525_v45 }
 0x17f   : > { %v1425_v3 = vmul.f32 1.442695, %v1390_v58  ;;  %v1427_v17 = vmul.f32 1.442695, %v1391_v59  ;;  %v1429_v27 = vmul.f32 1.442695, %v1392_v4  ;;  %v1698_v38 = vadd.f32 %v1697_v49, %v1696_v16 }
 0x180   : > { %2284 = vpow2.f32 %v1419_v18  ;;  %1596 = vst [vmem:[#allocation4] sm:$0x1] %v1595_v48  ;;  %v1431_v5 = vmul.f32 1.442695, %v1393_v8  ;;  %v1433_v26 = vmul.f32 1.442695, %v1394_v37  ;;  %v3589_v0 = vsub.f32 %v3208_v51, %v3353_v10 }
 0x181   : > { %2286 = vpow2.f32 %v1421_v34  ;;  %v1699_v28 = vadd.f32 %v1698_v38, %v1597_v23  ;;  %v1435_v45 = vmul.f32 1.442695, %v1395_v42  ;;  %v1437_v4 = vmul.f32 1.442695, %v1396_v35 }
 0x182   : > { %2288 = vpow2.f32 %v1423_v47  ;;  %v1439_v8 = vmul.f32 1.442695, %v1397_v39  ;;  %v1441_v42 = vmul.f32 1.442695, %v1398_v62  ;;  %v1443_v35 = vmul.f32 1.442695, %v1399_v11 }
 0x183   : > { %2290 = vpow2.f32 %v1425_v3  ;;  %1700 = vst [vmem:[#allocation5] sm:$0x1] %v1699_v28  ;;  %v1445_v18 = vmul.f32 1.442695, %v1400_v57  ;;  %v1447_v47 = vmul.f32 1.442695, %v1401_v6  ;;  %v3590_v60 = vsub.f32 %v3234_v20, %v3353_v10 }
 0x184   : > { %2292 = vpow2.f32 %v1427_v17  ;;  %v1449_v21 = vmul.f32 1.442695, %v1402_v44  ;;  %v1451_v43 = vmul.f32 1.442695, %v1403_v55  ;;  %v1453_v13 = vmul.f32 1.442695, %v1404_v31 }
 0x185   : > { %2294 = vpow2.f32 %v1429_v27  ;;  %v1455_v29 = vmul.f32 1.442695, %v1405_v50  ;;  %v1457_v9 = vmul.f32 1.442695, %v1406_v40  ;;  %v1459_v30 = vmul.f32 1.442695, %v1407_v22 }
 0x186   : > { %2296 = vpow2.f32 %v1431_v5  ;;  %v1461_v63 = vmul.f32 1.442695, %v1408_v12  ;;  %v1463_v19 = vmul.f32 1.442695, %v1409_v1  ;;  %v1465_v61 = vmul.f32 1.442695, %v1410_v54 }
 0x187   : > { %2298 = vpow2.f32 %v1433_v26  ;;  %v1467_v24 = vmul.f32 1.442695, %v1411_v41  ;;  %v1469_v53 = vmul.f32 1.442695, %v1412_v56  ;;  %v1471_v54 = vmul.f32 1.442695, %v3589_v0 }
 0x188   : > { %2300 = vpow2.f32 %v1435_v45  ;;  %v1473_v41 = vmul.f32 1.442695, %v3590_v60  ;;  %v3591_v15 = vsub.f32 %v3297_v36, %v3353_v10  ;;  %v3592_v51 = vsub.f32 %v3311_v33, %v3353_v10 }
 0x189   : > { %2302 = vpow2.f32 %v1437_v4  ;;  %v3593_v20 = vsub.f32 %v3285_v52, %v3353_v10  ;;  %v1481_v36 = vmul.f32 1.442695, %v1418_v46 }
 0x18a   : > { %v2285_v14 = vpop.eup %2284  ;;  %v3428_v38 = vld [vmem:[#allocation5] sm:$0x1]  ;;  %2304 = vpow2.f32 %v1439_v8  ;;  %v1475_v56 = vmul.f32 1.442695, %v3591_v15 }
 0x18b   : > { %v2287_v32 = vpop.eup %2286  ;;  %1719 = vst [vmem:[%s309_s25] sm:$0x1] %v3428_v38  ;;  %2306 = vpow2.f32 %v1441_v42 }
 0x18c   : > { %v1485_v58 = vadd.f32 %v2287_v32, %v2285_v14  ;;  %v2289_v59 = vpop.eup %2288  ;;  %2308 = vpow2.f32 %v1443_v35 }
 0x18d   : > { %v2291_v16 = vpop.eup %2290  ;;  %2310 = vpow2.f32 %v1445_v18 }
 0x18e   : > { %v1486_v49 = vadd.f32 %v2289_v59, %v1485_v58  ;;  %v2293_v37 = vpop.eup %2292  ;;  %2312 = vpow2.f32 %v1447_v47 }
 0x18f   : > { %v2295_v27 = vpop.eup %2294  ;;  %2314 = vpow2.f32 %v1449_v21 }
 0x190   : > { %v1487_v17 = vadd.f32 %v2291_v16, %v1486_v49  ;;  %v2297_v23 = vpop.eup %2296  ;;  %2316 = vpow2.f32 %v1451_v43 }
 0x191   : > { %v2299_v62 = vpop.eup %2298  ;;  %2318 = vpow2.f32 %v1453_v13  ;;  %v3594_v13 = vsub.f32 %v3344_v2, %v3348_v25 }
 0x192   : > { %v1488_v5 = vadd.f32 %v2293_v37, %v1487_v17  ;;  %v2301_v3 = vpop.eup %2300  ;;  %2320 = vpow2.f32 %v1455_v29 }
 0x193   : > { %v2303_v26 = vpop.eup %2302  ;;  %2322 = vpow2.f32 %v1457_v9 }
 0x194   : > { %v1489_v39 = vadd.f32 %v2295_v27, %v1488_v5  ;;  %v2305_v28 = vpop.eup %2304  ;;  %2324 = vpow2.f32 %v1459_v30  ;;  %v1483_v30 = vld [vmem:[#allocation3] sm:$0x1] }
 0x195   : > { %v2307_v14 = vpop.eup %2306  ;;  %2326 = vpow2.f32 %v1461_v63 }
 0x196   : > { %v1490_v34 = vadd.f32 %v2297_v23, %v1489_v39  ;;  %v2309_v32 = vpop.eup %2308  ;;  %2328 = vpow2.f32 %v1463_v19  ;;  %v1477_v39 = vmul.f32 1.442695, %v3592_v51 }
 0x197   : > { %v2311_v45 = vpop.eup %2310  ;;  %2330 = vpow2.f32 %v1465_v61 }
 0x198   : > { %v1491_v48 = vadd.f32 %v2299_v62, %v1490_v34  ;;  %v2313_v58 = vpop.eup %2312  ;;  %2332 = vpow2.f32 %v1467_v24  ;;  %v1479_v34 = vmul.f32 1.442695, %v3593_v20 }
 0x199   : > { %v2315_v59 = vpop.eup %2314  ;;  %2334 = vpow2.f32 %v1469_v53 }
 0x19a   : > { %v1492_v11 = vadd.f32 %v2301_v3, %v1491_v48  ;;  %v2317_v4 = vpop.eup %2316  ;;  %2336 = vpow2.f32 %v1471_v54 }
 0x19b   : > { %v2319_v49 = vpop.eup %2318  ;;  %2338 = vpow2.f32 %v1473_v41 }
 0x19c   : > { %v1493_v57 = vadd.f32 %v2303_v26, %v1492_v11  ;;  %v2321_v16 = vpop.eup %2320  ;;  %2340 = vpow2.f32 %v1475_v56 }
 0x19d   : > { %v2323_v8 = vpop.eup %2322  ;;  %2342 = vpow2.f32 %v1477_v39 }
 0x19e   : > { %v1494_v6 = vadd.f32 %v2305_v28, %v1493_v57  ;;  %v2325_v37 = vpop.eup %2324  ;;  %2344 = vpow2.f32 %v1479_v34 }
 0x19f   : > { %v2327_v5 = vpop.eup %2326  ;;  %2346 = vpow2.f32 %v1481_v36 }
 0x1a0   : > { %v1495_v44 = vadd.f32 %v2307_v14, %v1494_v6  ;;  %v2329_v35 = vpop.eup %2328  ;;  %v1379_v6 = vmul.f32 1.442695, %v3594_v13 }
 0x1a1   : > { %v2331_v18 = vpop.eup %2330 }
 0x1a2   : > { %v1496_v55 = vadd.f32 %v2309_v32, %v1495_v44  ;;  %v2333_v47 = vpop.eup %2332  ;;  %2348 = vpow2.f32 %v1379_v6 }
 0x1a3   : > { %v2335_v3 = vpop.eup %2334 }
 0x1a4   : > { %v1497_v31 = vadd.f32 %v2311_v45, %v1496_v55  ;;  %v2337_v33 = vpop.eup %2336 }
 0x1a5   : > { %v2339_v26 = vpop.eup %2338 }
 0x1a6   : > { %v1498_v50 = vadd.f32 %v2313_v58, %v1497_v31  ;;  %v2341_v57 = vpop.eup %2340 }
 0x1a7   : > { %v2343_v52 = vpop.eup %2342 }
 0x1a8   : > { %v1499_v40 = vadd.f32 %v2315_v59, %v1498_v50  ;;  %v2345_v29 = vpop.eup %2344  ;;  %v1714_v59 = vadd.f32 1e-08, %v3428_v38 }
 0x1a9   : > { %v2347_v10 = vpop.eup %2346 }
 0x1aa   : > { %v1500_v22 = vadd.f32 %v2317_v4, %v1499_v40  ;;  %v1705_v4 = vld [vmem:[#allocation2] sm:$0x1] }
 0x1ac   : > { %v1501_v12 = vadd.f32 %v2319_v49, %v1500_v22  ;;  %v2349_v45 = vpop.eup %2348  ;;  %v1711_v49 = vld [vmem:[#allocation4] sm:$0x1] }
 0x1ad   : > { %v1484_v58 = vmul.f32 %v2349_v45, %v1483_v30 }
 0x1ae   : > { %v1502_v1 = vadd.f32 %v2321_v16, %v1501_v12 }
 0x1b0   : > { %v1503_v17 = vadd.f32 %v2323_v8, %v1502_v1 }
 0x1b2   : > { %v1504_v42 = vadd.f32 %v2325_v37, %v1503_v17 }
 0x1b4   : > { %v1505_v27 = vadd.f32 %v2327_v5, %v1504_v42 }
 0x1b6   : > { %v1506_v23 = vadd.f32 %v2329_v35, %v1505_v27 }
 0x1b8   : > { %v1507_v62 = vadd.f32 %v2331_v18, %v1506_v23 }
 0x1ba   : > { %v1508_v48 = vadd.f32 %v2333_v47, %v1507_v62 }
 0x1bc   : > { %v1509_v21 = vadd.f32 %v2335_v3, %v1508_v48 }
 0x1be   : > { %v1510_v11 = vadd.f32 %v2337_v33, %v1509_v21 }
 0x1c0   : > { %v1511_v43 = vadd.f32 %v2339_v26, %v1510_v11 }
 0x1c2   : > { %v1512_v28 = vadd.f32 %v2341_v57, %v1511_v43 }
 0x1c4   : > { %v1513_v14 = vadd.f32 %v2343_v52, %v1512_v28 }
 0x1c6   : > { %v1514_v7 = vadd.f32 %v2345_v29, %v1513_v14 }
 0x1c8   : > { %v1515_v46 = vadd.f32 %v2347_v10, %v1514_v7 }
 0x1ca   : > { %v1516_v44 = vrot.slane %v1515_v46, 4 }
 0x1cc   : > { %v1517_v32 = vadd.f32 %v1516_v44, %v1515_v46 }
 0x1ce   : > { %v1518_v9 = vrot.slane %v1517_v32, 2 }
 0x1d0   : > { %v1519_v55 = vadd.f32 %v1518_v9, %v1517_v32 }
 0x1d2   : > { %v1520_v31 = vrot.slane %v1519_v55, 1 }
 0x1d4   : > { %v1521_v63 = vadd.f32 %v1520_v31, %v1519_v55 }
 0x1d6   : > { %v1522_v50 = vadd.f32 %v1521_v63, %v1484_v58 }
 0x1d8   : > { %1523 = vst [vmem:[#allocation3] sm:$0x1] %v1522_v50 }
 0x1df   : > { %v1706_v2 = vld [vmem:[#allocation3] sm:$0x1] }
 0x1e0   : > { %v1707_v25 = vadd.f32 1e-08, %v1706_v2 }
 0x1e2   : > { %2350 = vlog2.f32 %v1707_v25 }
 0x1e3   : > { %2352 = vrcp.f32 %v1714_v59 }
 0x1ec   : > { %v2351_v19 = vpop.eup %2350 }
 0x1ed   : > { %v1709_v40 = vmul.f32 0.6931472, %v2351_v19  ;;  %v2353_v12 = vpop.eup %2352 }
 0x1ef   : > { %v1710_v61 = vadd.f32 %v1709_v40, %v1705_v4 }
 0x1f1   : > { %v1712_v22 = vmul.f32 %v1710_v61, %v3428_v38 }
 0x1f3   : > { %v1713_v24 = vsub.f32 %v1711_v49, %v1712_v22 }
 0x1f5   : > { %v1716_v16 = vmul.f32 %v2353_v12, %v1713_v24 }
 0x1f7   : > { %v1717_v53 = vmul.f32 -1.4285715, %v1716_v16 }
 0x1f9   : > { %1718 = vst [vmem:[%s306_s28] sm:$0x1] %v1717_v53 }
 0x1fa PF: > { %s16_s20 = sadd.s32 1, %s2376_s20   ;;  %s3595_s18 = smov %s2372_s19 }
 0x1fb   : > { %p13_p6 = scmp.ge.s32.totalorder %s16_s20, 4   ;;  %s3596_s19 = smov %s3598_s21 }
 0x1fd   :  { %15 = sbr.rel (!%p13_p6) target bundleno = 2 (0x2), region = 95 }

</bundles_post_ra>
